<compile_context>
chip_gen: v6e
topology: v6e:2x2x1
jax: 0.10.0
libtpu: 0.0.40
codegen_flags: <defaults>
</compile_context>

<pallas_src>
import math

import jax
import jax.numpy as jnp
from jax.experimental import pallas as pl
from jax.experimental.pallas import tpu as pltpu

# ----------------------------------------------------------------------------
# Config (stands in for `args`)
# ----------------------------------------------------------------------------
SEQ_LEN = 4           # args.seq_len   -> final view(-1, 2*SEQ_LEN)
RNN_LAYERS = 2        # args.rnn_layers

# Module constructor arguments (small, deterministic synthetic config)
EMB_TMPL_LIST_INP = [16, 20]
EMB_TMPL_LIST_OUT = [8, 8]
EMB_STATIC_LIST_INP = [12, 16]
EMB_STATIC_LIST_OUT = [4, 4]
MLP_TMPL_ID = 16
MLP_STATIC_ID = 8

# Derived dims, exactly mirroring the PyTorch __init__ arithmetic
IN_ENC_STAT = MLP_STATIC_ID + sum(EMB_STATIC_LIST_OUT)                          # 16
OUT_ENC_STAT = 2 ** int(math.log(MLP_STATIC_ID + sum(EMB_STATIC_LIST_INP), 2))  # 32
IN_RNN = MLP_TMPL_ID + sum(EMB_TMPL_LIST_OUT)                                   # 32
OUT_RNN = 2 ** int(math.log(MLP_TMPL_ID + sum(EMB_TMPL_LIST_OUT), 2))           # 32
IN_DEC = OUT_ENC_STAT + OUT_RNN                                                 # 64
OUT_DEC = 2 ** int(math.log(IN_DEC, 2)) // 4                                    # 16
NUM_FC_LAYERS = int(math.log(OUT_DEC, 2) // 4)                                  # 1

H = OUT_RNN            # LSTM hidden size (32); 4H = 128 = one full lane width
SLAB_LANES = 128
assert 4 * H <= SLAB_LANES

_VMEM_SPEC = pl.BlockSpec(memory_space=pltpu.MemorySpace.VMEM)


def _round8(n):
    return -(-n // 8) * 8


def _build_layout():
    """Static row layout of the single packed parameter slab.

    Every block starts at an 8-aligned sublane offset in a (SLAB_ROWS, 128)
    f32 array, so in-kernel reads are clean static window loads and the whole
    parameter set is ONE HBM->VMEM DMA.
    """
    layout = {}
    off = 0

    def add(name, rows, cols):
        nonlocal off
        assert cols <= SLAB_LANES
        layout[name] = (off, rows, cols)
        off += _round8(rows)

    for l in range(RNN_LAYERS):
        din = IN_RNN if l == 0 else H
        add(f"wih_{l}", din, 4 * H)        # (Din, 4H), pre-transposed
        add(f"whh_{l}", H, 4 * H)          # (H, 4H), pre-transposed, fused gates
        add(f"b_{l}", 1, 4 * H)            # b_ih + b_hh
    add("enc_w", IN_ENC_STAT, OUT_ENC_STAT)
    add("enc_b", 1, OUT_ENC_STAT)
    add("dec_w_rnn", OUT_RNN, OUT_DEC)     # dec_w split by input source:
    add("dec_w_mlp", OUT_ENC_STAT, OUT_DEC)  # avoids lane concat in the kernel
    add("dec_b", 1, OUT_DEC)
    d = OUT_DEC
    for i in range(NUM_FC_LAYERS):
        add(f"int_w_{i}", d, d // 4)
        add(f"int_b_{i}", 1, d // 4)
        d = d // 4
    add("fin_w", d, 1)
    add("fin_b", 1, 1)
    return layout, off


LAYOUT, SLAB_ROWS = _build_layout()


def _sigmoid(x):
    # Exact sigmoid via a single tanh (1 EUP op): sigma(x) = 0.5*tanh(x/2)+0.5.
    return 0.5 * jnp.tanh(0.5 * x) + 0.5


# ----------------------------------------------------------------------------
# Fused forward kernel (LSTM stack + static encoder + decoder head)
# ----------------------------------------------------------------------------
def make_fused_forward_kernel(T, B, rnn_layers, num_interim):
    def kernel(enc_ref, mlp_ref, slab_ref, out_ref, gx_ref, rnn_ref):
        f32 = jnp.float32
        bf16 = jnp.bfloat16

        def blk(name):
            off, r, c = LAYOUT[name]
            return slab_ref[off:off + r, :c]

        # ---------------- LSTM stack ----------------
        # Hoisted layer-0 input projection + bias: one (T*B, Din) x (Din, 4H)
        # MXU matmul, staged in VMEM so the recurrence reads one aligned
        # (B, 4H) slab per step (no repeated sublane extraction of a live value).
        x_bf = enc_ref[...].astype(bf16)                          # (T*B, Din)
        gx0 = jnp.dot(x_bf, blk("wih_0").astype(bf16),
                      preferred_element_type=f32) + blk("b_0")    # (T*B, 4H)
        gx_ref[...] = gx0

        # Hoisted, bf16-cast recurrent / input weights (once, outside the loop).
        whh = [blk(f"whh_{l}").astype(bf16) for l in range(rnn_layers)]
        wih = [None] + [blk(f"wih_{l}").astype(bf16) for l in range(1, rnn_layers)]
        bias = [None] + [blk(f"b_{l}") for l in range(1, rnn_layers)]

        def cell(pre, c_prev):
            # pre: (B, 4H) fused gate pre-activation, torch order (i, f, g, o).
            sg = _sigmoid(pre)                # one EUP tanh over the full slab
            tg = jnp.tanh(pre)                # one EUP tanh over the full slab
            i_g = sg[:, 0 * H:1 * H]
            f_g = sg[:, 1 * H:2 * H]
            g_g = tg[:, 2 * H:3 * H]
            o_g = sg[:, 3 * H:4 * H]
            c_new = f_g * c_prev + i_g * g_g
            h_new = o_g * jnp.tanh(c_new)     # 3rd (and last) EUP op per step
            return h_new, c_new

        zero = jnp.zeros((B, H), f32)
        h = [zero] * rnn_layers
        c = [zero] * rnn_layers

        # Skewed wavefront over the layer stack: at unrolled step s, layer l
        # processes t = s - l, so the per-layer serial chains can overlap.
        # Layers are visited in DECREASING order so h[l-1] still holds the
        # previous step's value when layer l consumes it.
        for s in range(T + rnn_layers - 1):
            for l in range(rnn_layers - 1, -1, -1):
                t = s - l
                if t < 0 or t >= T:
                    continue
                if l == 0:
                    pre = gx_ref[t * B:(t + 1) * B, :] + jnp.dot(
                        h[0].astype(bf16), whh[0], preferred_element_type=f32)
                else:
                    pre = (bias[l]
                           + jnp.dot(h[l - 1].astype(bf16), wih[l],
                                     preferred_element_type=f32)
                           + jnp.dot(h[l].astype(bf16), whh[l],
                                     preferred_element_type=f32))
                h[l], c[l] = cell(pre, c[l])
                if l == rnn_layers - 1:
                    # Row order matches torch's rnn_out.view(T*B, H).
                    rnn_ref[t * B:(t + 1) * B, :] = h[l]

        rnn_flat = rnn_ref[...]                                   # (T*B, H)

        # ---------------- static encoder (Linear + ReLU) ----------------
        mlp_enc = jnp.maximum(
            jnp.dot(mlp_ref[...], blk("enc_w"),
                    preferred_element_type=f32) + blk("enc_b"), 0.0)

        # ---------------- decoder head (dec_w pre-split -> no lane concat) ---
        hdec = jnp.maximum(
            jnp.dot(rnn_flat, blk("dec_w_rnn"), preferred_element_type=f32)
            + jnp.dot(mlp_enc, blk("dec_w_mlp"), preferred_element_type=f32)
            + blk("dec_b"), 0.0)
        for i in range(num_interim):
            hdec = jnp.maximum(
                jnp.dot(hdec, blk(f"int_w_{i}"),
                        preferred_element_type=f32) + blk(f"int_b_{i}"), 0.0)
        logits = jnp.dot(hdec, blk("fin_w"),
                         preferred_element_type=f32) + blk("fin_b")
        # TODO(synk): (T*B, 1) output is a 1-lane-wide store; acceptable at N=16
        # (review: lowest-priority cleanup).
        out_ref[...] = _sigmoid(logits)

    return kernel


def fused_forward(enc_flat, mlp_in, slab, T, B):
    """Single pallas_call for the entire hot path: 3 inputs, 1 output."""
    N = enc_flat.shape[0]
    kernel = make_fused_forward_kernel(T, B, RNN_LAYERS, NUM_FC_LAYERS)
    # TODO(synk): at production batch sizes add a leading batch grid axis with
    # dimension_semantics=("parallel",) so both v7x TensorCores shard the
    # batch; at B=2/T=8 a single grid-less invocation is fastest.
    return pl.pallas_call(
        kernel,
        out_shape=jax.ShapeDtypeStruct((N, 1), jnp.float32),
        in_specs=[_VMEM_SPEC, _VMEM_SPEC, _VMEM_SPEC],
        out_specs=_VMEM_SPEC,
        scratch_shapes=[
            pltpu.VMEM((N, 4 * H), jnp.float32),   # staged layer-0 gate proj
            pltpu.VMEM((N, H), jnp.float32),       # top-layer rnn outputs
        ],
    )(enc_flat, mlp_in, slab)


def multi_embedding(tables, idx):
    """MultiEmbedding: per-column table lookup, concat on last axis (JAX glue)."""
    # TODO(synk): integer gathers stay outside Pallas (no clean tiny-table
    # gather kernel worth writing at this scale).
    outs = [jnp.take(tables[k], idx[..., k], axis=0) for k in range(len(tables))]
    return jnp.concatenate(outs, axis=-1)


# ----------------------------------------------------------------------------
# Parameter construction (deterministic, torch-like uniform init)
# ----------------------------------------------------------------------------
def _uniform(key, shape, fan_in):
    bound = 1.0 / math.sqrt(max(fan_in, 1))
    return jax.random.uniform(key, shape, jnp.float32, -bound, bound)


def init_params(key):
    keys = iter(jax.random.split(key, 64))
    p = {}
    p["emb_tmpl"] = [
        jax.random.normal(next(keys), (n, d), jnp.float32) * 0.1
        for n, d in zip(EMB_TMPL_LIST_INP, EMB_TMPL_LIST_OUT)]
    p["emb_static"] = [
        jax.random.normal(next(keys), (n, d), jnp.float32) * 0.1
        for n, d in zip(EMB_STATIC_LIST_INP, EMB_STATIC_LIST_OUT)]

    # encoder_static: Linear(IN_ENC_STAT, OUT_ENC_STAT)
    p["enc_w"] = _uniform(next(keys), (OUT_ENC_STAT, IN_ENC_STAT), IN_ENC_STAT)
    p["enc_b"] = _uniform(next(keys), (OUT_ENC_STAT,), IN_ENC_STAT)

    # LSTM(IN_RNN, OUT_RNN, RNN_LAYERS), torch layout (4H, Din)/(4H, H)
    p["lstm"] = []
    for layer in range(RNN_LAYERS):
        din = IN_RNN if layer == 0 else H
        w_ih = _uniform(next(keys), (4 * H, din), H)
        w_hh = _uniform(next(keys), (4 * H, H), H)
        b_ih = _uniform(next(keys), (4 * H,), H)
        b_hh = _uniform(next(keys), (4 * H,), H)
        p["lstm"].append((w_ih, w_hh, b_ih, b_hh))

    # decoder: Linear(IN_DEC, OUT_DEC)
    p["dec_w"] = _uniform(next(keys), (OUT_DEC, IN_DEC), IN_DEC)
    p["dec_b"] = _uniform(next(keys), (OUT_DEC,), IN_DEC)

    # decoder_interim chain
    p["interim"] = []
    d = OUT_DEC
    for _ in range(NUM_FC_LAYERS):
        w = _uniform(next(keys), (d // 4, d), d)
        b = _uniform(next(keys), (d // 4,), d)
        p["interim"].append((w, b))
        d = d // 4

    # decoder_final: Linear(d, 1)
    p["fin_w"] = _uniform(next(keys), (1, d), d)
    p["fin_b"] = _uniform(next(keys), (1,), d)
    return p


def prepare_params(p):
    """One-time inference prep: transpose weights to (in, out), sum LSTM
    biases, split dec_w by input source, and pack EVERYTHING into one
    (SLAB_ROWS, 128) f32 slab so the kernel needs a single parameter DMA."""
    slab = jnp.zeros((SLAB_ROWS, SLAB_LANES), jnp.float32)

    def put(s, name, mat):
        off, r, c = LAYOUT[name]
        assert mat.shape == (r, c), (name, mat.shape, (r, c))
        return s.at[off:off + r, :c].set(mat.astype(jnp.float32))

    for l, (w_ih, w_hh, b_ih, b_hh) in enumerate(p["lstm"]):
        slab = put(slab, f"wih_{l}", jnp.transpose(w_ih))           # (Din, 4H)
        slab = put(slab, f"whh_{l}", jnp.transpose(w_hh))           # (H, 4H) fused
        slab = put(slab, f"b_{l}", (b_ih + b_hh).reshape(1, -1))

    slab = put(slab, "enc_w", jnp.transpose(p["enc_w"]))
    slab = put(slab, "enc_b", p["enc_b"].reshape(1, -1))

    dec_w_t = jnp.transpose(p["dec_w"])                             # (IN_DEC, OUT_DEC)
    # torch cat order is (rnn_out, mlp_enc): rows [:OUT_RNN] multiply rnn_flat.
    slab = put(slab, "dec_w_rnn", dec_w_t[:OUT_RNN])
    slab = put(slab, "dec_w_mlp", dec_w_t[OUT_RNN:])
    slab = put(slab, "dec_b", p["dec_b"].reshape(1, -1))

    for i, (w, b) in enumerate(p["interim"]):
        slab = put(slab, f"int_w_{i}", jnp.transpose(w))
        slab = put(slab, f"int_b_{i}", b.reshape(1, -1))

    slab = put(slab, "fin_w", jnp.transpose(p["fin_w"]))
    slab = put(slab, "fin_b", p["fin_b"].reshape(1, -1))

    return {"emb_tmpl": p["emb_tmpl"], "emb_static": p["emb_static"],
            "slab": slab}


# ----------------------------------------------------------------------------
# Forward pass (mirrors Neural_Network_lstmfused.forward)
# ----------------------------------------------------------------------------
def forward(iparams, mlp_static_data, mlp_tmpl_data, emb_static_data, emb_tmpl_data):
    d0, d1, _ = emb_static_data.shape
    emb_static_flat = emb_static_data.reshape(d0 * d1, -1)
    mlp_static_flat = mlp_static_data.reshape(d0 * d1, -1)

    emb_temporal = multi_embedding(iparams["emb_tmpl"], emb_tmpl_data)    # (B, T, 16)
    emb_static = multi_embedding(iparams["emb_static"], emb_static_flat)  # (B*T, 8)

    enc_data = jnp.concatenate([mlp_tmpl_data, emb_temporal], axis=2)     # (B, T, 32)
    B_, T_ = enc_data.shape[0], enc_data.shape[1]
    # torch: enc_data.view(T, B, -1) is a RAW reshape (not a transpose), so the
    # flattened (T*B, F) LSTM input is literally enc_data.reshape(B*T, F).
    # The LSTM therefore does not see true time-major data — bug-for-bug match.
    enc_flat = enc_data.reshape(B_ * T_, -1)                              # (T*B, 32)

    mlp_in = jnp.concatenate([mlp_static_flat, emb_static], axis=1)       # (B*T, 16)

    preds = fused_forward(enc_flat, mlp_in, iparams["slab"], T=T_, B=B_)  # (T*B, 1)
    return preds.reshape(-1, 2 * SEQ_LEN)


# ----------------------------------------------------------------------------
if __name__ == "__main__":
    B = 2
    T = 2 * SEQ_LEN  # 8; final view(-1, 2*SEQ_LEN) requires B*T % (2*SEQ_LEN) == 0

    root = jax.random.PRNGKey(0)
    k_params, k1, k2, k3, k4 = jax.random.split(root, 5)
    params = init_params(k_params)
    iparams = prepare_params(params)   # one-time transpose/split/pack into the slab

    mlp_static_data = jax.random.normal(k1, (B, T, MLP_STATIC_ID), jnp.float32)
    mlp_tmpl_data = jax.random.normal(k2, (B, T, MLP_TMPL_ID), jnp.float32)
    emb_static_data = jnp.stack(
        [jax.random.randint(jax.random.fold_in(k3, i), (B, T), 0, n)
         for i, n in enumerate(EMB_STATIC_LIST_INP)], axis=-1).astype(jnp.int32)
    emb_tmpl_data = jnp.stack(
        [jax.random.randint(jax.random.fold_in(k4, i), (B, T), 0, n)
         for i, n in enumerate(EMB_TMPL_LIST_INP)], axis=-1).astype(jnp.int32)

    preds = jax.jit(forward)(iparams, mlp_static_data, mlp_tmpl_data,
                             emb_static_data, emb_tmpl_data)
    preds = jax.block_until_ready(preds)
    assert preds.shape == (B * T // (2 * SEQ_LEN), 2 * SEQ_LEN)
    assert bool(jnp.all(jnp.isfinite(preds)))
    assert bool(jnp.all((preds >= 0.0) & (preds <= 1.0)))
    print("KERNEL_OK")
</pallas_src>

<mosaic_0001>
module attributes {stable_mosaic.version = 11 : i64} {
  func.func @kernel(%arg0: memref<16x32xf32, #tpu.memory_space<vmem>>, %arg1: memref<16x16xf32, #tpu.memory_space<vmem>>, %arg2: memref<280x128xf32, #tpu.memory_space<vmem>>, %arg3: memref<16x1xf32, #tpu.memory_space<vmem>>, %arg4: memref<16x128xf32, #tpu.memory_space<vmem>>, %arg5: memref<16x32xf32, #tpu.memory_space<vmem>>) attributes {dimension_semantics = [], scalar_prefetch = 0 : i64, scratch_operands = 2 : i64, tpu.core_type = #tpu.core_type<tc>} {
    %c0 = arith.constant 0 : index
    %c0_0 = arith.constant 0 : index
    %0 = vector.load %arg0[%c0, %c0_0] : memref<16x32xf32, #tpu.memory_space<vmem>>, vector<16x32xf32>
    %1 = arith.truncf %0 : vector<16x32xf32> to vector<16x32xbf16>
    %c0_1 = arith.constant 0 : index
    %c0_2 = arith.constant 0 : index
    %2 = vector.load %arg2[%c0_1, %c0_2] : memref<280x128xf32, #tpu.memory_space<vmem>>, vector<32x128xf32>
    %3 = arith.truncf %2 : vector<32x128xf32> to vector<32x128xbf16>
    %cst = arith.constant dense<0.000000e+00> : vector<16x128xf32>
    %4 = tpu.matmul %1, %3, %cst {dimension_numbers = #tpu.dot_dimension_numbers<[1], [0], [0], [1], [0, 0, 1, 1], [], []>} : vector<16x32xbf16>, vector<32x128xbf16>, vector<16x128xf32> -> vector<16x128xf32>
    %c64 = arith.constant 64 : index
    %c0_3 = arith.constant 0 : index
    %5 = vector.load %arg2[%c64, %c0_3] : memref<280x128xf32, #tpu.memory_space<vmem>>, vector<1x128xf32>
    %6 = vector.broadcast %5 : vector<1x128xf32> to vector<16x128xf32>
    %7 = arith.addf %4, %6 : vector<16x128xf32>
    %c0_4 = arith.constant 0 : index
    %c0_5 = arith.constant 0 : index
    %8 = vector.load %arg4[%c0_4, %c0_5] : memref<16x128xf32, #tpu.memory_space<vmem>>, vector<16x128xf32>
    tpu.vector_store %arg4[%c0_4, %c0_5], %7 {strides = array<i32>} : memref<16x128xf32, #tpu.memory_space<vmem>>, vector<16x128xf32>,
    %c32 = arith.constant 32 : index
    %c0_6 = arith.constant 0 : index
    %9 = vector.load %arg2[%c32, %c0_6] : memref<280x128xf32, #tpu.memory_space<vmem>>, vector<32x128xf32>
    %10 = arith.truncf %9 : vector<32x128xf32> to vector<32x128xbf16>
    %c104 = arith.constant 104 : index
    %c0_7 = arith.constant 0 : index
    %11 = vector.load %arg2[%c104, %c0_7] : memref<280x128xf32, #tpu.memory_space<vmem>>, vector<32x128xf32>
    %12 = arith.truncf %11 : vector<32x128xf32> to vector<32x128xbf16>
    %c72 = arith.constant 72 : index
    %c0_8 = arith.constant 0 : index
    %13 = vector.load %arg2[%c72, %c0_8] : memref<280x128xf32, #tpu.memory_space<vmem>>, vector<32x128xf32>
    %14 = arith.truncf %13 : vector<32x128xf32> to vector<32x128xbf16>
    %c136 = arith.constant 136 : index
    %c0_9 = arith.constant 0 : index
    %15 = vector.load %arg2[%c136, %c0_9] : memref<280x128xf32, #tpu.memory_space<vmem>>, vector<1x128xf32>
    %cst_10 = arith.constant 0.000000e+00 : f32
    %16 = vector.broadcast %cst_10 : f32 to vector<2x32xf32>
    %c0_11 = arith.constant 0 : index
    %c0_12 = arith.constant 0 : index
    %17 = vector.load %arg4[%c0_11, %c0_12] : memref<16x128xf32, #tpu.memory_space<vmem>>, vector<2x128xf32>
    %18 = arith.truncf %16 : vector<2x32xf32> to vector<2x32xbf16>
    %cst_13 = arith.constant dense<0.000000e+00> : vector<2x128xf32>
    %19 = tpu.matmul %18, %10, %cst_13 {dimension_numbers = #tpu.dot_dimension_numbers<[1], [0], [0], [1], [0, 0, 1, 1], [], []>} : vector<2x32xbf16>, vector<32x128xbf16>, vector<2x128xf32> -> vector<2x128xf32>
    %20 = arith.addf %17, %19 : vector<2x128xf32>
    %cst_14 = arith.constant 5.000000e-01 : f32
    %21 = vector.broadcast %cst_14 : f32 to vector<2x128xf32>
    %22 = arith.mulf %21, %20 : vector<2x128xf32>
    %23 = math.tanh %22 : vector<2x128xf32>
    %cst_15 = arith.constant 5.000000e-01 : f32
    %24 = vector.broadcast %cst_15 : f32 to vector<2x128xf32>
    %25 = arith.mulf %24, %23 : vector<2x128xf32>
    %cst_16 = arith.constant 5.000000e-01 : f32
    %26 = vector.broadcast %cst_16 : f32 to vector<2x128xf32>
    %27 = arith.addf %25, %26 : vector<2x128xf32>
    %28 = math.tanh %20 : vector<2x128xf32>
    %29 = vector.extract_strided_slice %27 {offsets = [0, 0], sizes = [2, 32], strides = [1, 1]} : vector<2x128xf32> to vector<2x32xf32>
    %30 = vector.extract_strided_slice %27 {offsets = [0, 32], sizes = [2, 32], strides = [1, 1]} : vector<2x128xf32> to vector<2x32xf32>
    %31 = vector.extract_strided_slice %28 {offsets = [0, 64], sizes = [2, 32], strides = [1, 1]} : vector<2x128xf32> to vector<2x32xf32>
    %32 = vector.extract_strided_slice %27 {offsets = [0, 96], sizes = [2, 32], strides = [1, 1]} : vector<2x128xf32> to vector<2x32xf32>
    %33 = arith.mulf %30, %16 : vector<2x32xf32>
    %34 = arith.mulf %29, %31 : vector<2x32xf32>
    %35 = arith.addf %33, %34 : vector<2x32xf32>
    %36 = math.tanh %35 : vector<2x32xf32>
    %37 = arith.mulf %32, %36 : vector<2x32xf32>
    %38 = arith.truncf %37 : vector<2x32xf32> to vector<2x32xbf16>
    %cst_17 = arith.constant dense<0.000000e+00> : vector<2x128xf32>
    %39 = tpu.matmul %38, %14, %cst_17 {dimension_numbers = #tpu.dot_dimension_numbers<[1], [0], [0], [1], [0, 0, 1, 1], [], []>} : vector<2x32xbf16>, vector<32x128xbf16>, vector<2x128xf32> -> vector<2x128xf32>
    %40 = vector.broadcast %15 : vector<1x128xf32> to vector<2x128xf32>
    %41 = arith.addf %40, %39 : vector<2x128xf32>
    %42 = arith.truncf %16 : vector<2x32xf32> to vector<2x32xbf16>
    %cst_18 = arith.constant dense<0.000000e+00> : vector<2x128xf32>
    %43 = tpu.matmul %42, %12, %cst_18 {dimension_numbers = #tpu.dot_dimension_numbers<[1], [0], [0], [1], [0, 0, 1, 1], [], []>} : vector<2x32xbf16>, vector<32x128xbf16>, vector<2x128xf32> -> vector<2x128xf32>
    %44 = arith.addf %41, %43 : vector<2x128xf32>
    %cst_19 = arith.constant 5.000000e-01 : f32
    %45 = vector.broadcast %cst_19 : f32 to vector<2x128xf32>
    %46 = arith.mulf %45, %44 : vector<2x128xf32>
    %47 = math.tanh %46 : vector<2x128xf32>
    %cst_20 = arith.constant 5.000000e-01 : f32
    %48 = vector.broadcast %cst_20 : f32 to vector<2x128xf32>
    %49 = arith.mulf %48, %47 : vector<2x128xf32>
    %cst_21 = arith.constant 5.000000e-01 : f32
    %50 = vector.broadcast %cst_21 : f32 to vector<2x128xf32>
    %51 = arith.addf %49, %50 : vector<2x128xf32>
    %52 = math.tanh %44 : vector<2x128xf32>
    %53 = vector.extract_strided_slice %51 {offsets = [0, 0], sizes = [2, 32], strides = [1, 1]} : vector<2x128xf32> to vector<2x32xf32>
    %54 = vector.extract_strided_slice %51 {offsets = [0, 32], sizes = [2, 32], strides = [1, 1]} : vector<2x128xf32> to vector<2x32xf32>
    %55 = vector.extract_strided_slice %52 {offsets = [0, 64], sizes = [2, 32], strides = [1, 1]} : vector<2x128xf32> to vector<2x32xf32>
    %56 = vector.extract_strided_slice %51 {offsets = [0, 96], sizes = [2, 32], strides = [1, 1]} : vector<2x128xf32> to vector<2x32xf32>
    %57 = arith.mulf %54, %16 : vector<2x32xf32>
    %58 = arith.mulf %53, %55 : vector<2x32xf32>
    %59 = arith.addf %57, %58 : vector<2x32xf32>
    %60 = math.tanh %59 : vector<2x32xf32>
    %61 = arith.mulf %56, %60 : vector<2x32xf32>
    %c0_22 = arith.constant 0 : index
    %c0_23 = arith.constant 0 : index
    %62 = vector.load %arg5[%c0_22, %c0_23] : memref<16x32xf32, #tpu.memory_space<vmem>>, vector<2x32xf32>
    tpu.vector_store %arg5[%c0_22, %c0_23], %61 {strides = array<i32>} : memref<16x32xf32, #tpu.memory_space<vmem>>, vector<2x32xf32>,
    %c2 = arith.constant 2 : index
    %c0_24 = arith.constant 0 : index
    %63 = vector.load %arg4[%c2, %c0_24] : memref<16x128xf32, #tpu.memory_space<vmem>>, vector<2x128xf32>
    %64 = arith.truncf %37 : vector<2x32xf32> to vector<2x32xbf16>
    %cst_25 = arith.constant dense<0.000000e+00> : vector<2x128xf32>
    %65 = tpu.matmul %64, %10, %cst_25 {dimension_numbers = #tpu.dot_dimension_numbers<[1], [0], [0], [1], [0, 0, 1, 1], [], []>} : vector<2x32xbf16>, vector<32x128xbf16>, vector<2x128xf32> -> vector<2x128xf32>
    %66 = arith.addf %63, %65 : vector<2x128xf32>
    %cst_26 = arith.constant 5.000000e-01 : f32
    %67 = vector.broadcast %cst_26 : f32 to vector<2x128xf32>
    %68 = arith.mulf %67, %66 : vector<2x128xf32>
    %69 = math.tanh %68 : vector<2x128xf32>
    %cst_27 = arith.constant 5.000000e-01 : f32
    %70 = vector.broadcast %cst_27 : f32 to vector<2x128xf32>
    %71 = arith.mulf %70, %69 : vector<2x128xf32>
    %cst_28 = arith.constant 5.000000e-01 : f32
    %72 = vector.broadcast %cst_28 : f32 to vector<2x128xf32>
    %73 = arith.addf %71, %72 : vector<2x128xf32>
    %74 = math.tanh %66 : vector<2x128xf32>
    %75 = vector.extract_strided_slice %73 {offsets = [0, 0], sizes = [2, 32], strides = [1, 1]} : vector<2x128xf32> to vector<2x32xf32>
    %76 = vector.extract_strided_slice %73 {offsets = [0, 32], sizes = [2, 32], strides = [1, 1]} : vector<2x128xf32> to vector<2x32xf32>
    %77 = vector.extract_strided_slice %74 {offsets = [0, 64], sizes = [2, 32], strides = [1, 1]} : vector<2x128xf32> to vector<2x32xf32>
    %78 = vector.extract_strided_slice %73 {offsets = [0, 96], sizes = [2, 32], strides = [1, 1]} : vector<2x128xf32> to vector<2x32xf32>
    %79 = arith.mulf %76, %35 : vector<2x32xf32>
    %80 = arith.mulf %75, %77 : vector<2x32xf32>
    %81 = arith.addf %79, %80 : vector<2x32xf32>
    %82 = math.tanh %81 : vector<2x32xf32>
    %83 = arith.mulf %78, %82 : vector<2x32xf32>
    %84 = arith.truncf %83 : vector<2x32xf32> to vector<2x32xbf16>
    %cst_29 = arith.constant dense<0.000000e+00> : vector<2x128xf32>
    %85 = tpu.matmul %84, %14, %cst_29 {dimension_numbers = #tpu.dot_dimension_numbers<[1], [0], [0], [1], [0, 0, 1, 1], [], []>} : vector<2x32xbf16>, vector<32x128xbf16>, vector<2x128xf32> -> vector<2x128xf32>
    %86 = vector.broadcast %15 : vector<1x128xf32> to vector<2x128xf32>
    %87 = arith.addf %86, %85 : vector<2x128xf32>
    %88 = arith.truncf %61 : vector<2x32xf32> to vector<2x32xbf16>
    %cst_30 = arith.constant dense<0.000000e+00> : vector<2x128xf32>
    %89 = tpu.matmul %88, %12, %cst_30 {dimension_numbers = #tpu.dot_dimension_numbers<[1], [0], [0], [1], [0, 0, 1, 1], [], []>} : vector<2x32xbf16>, vector<32x128xbf16>, vector<2x128xf32> -> vector<2x128xf32>
    %90 = arith.addf %87, %89 : vector<2x128xf32>
    %cst_31 = arith.constant 5.000000e-01 : f32
    %91 = vector.broadcast %cst_31 : f32 to vector<2x128xf32>
    %92 = arith.mulf %91, %90 : vector<2x128xf32>
    %93 = math.tanh %92 : vector<2x128xf32>
    %cst_32 = arith.constant 5.000000e-01 : f32
    %94 = vector.broadcast %cst_32 : f32 to vector<2x128xf32>
    %95 = arith.mulf %94, %93 : vector<2x128xf32>
    %cst_33 = arith.constant 5.000000e-01 : f32
    %96 = vector.broadcast %cst_33 : f32 to vector<2x128xf32>
    %97 = arith.addf %95, %96 : vector<2x128xf32>
    %98 = math.tanh %90 : vector<2x128xf32>
    %99 = vector.extract_strided_slice %97 {offsets = [0, 0], sizes = [2, 32], strides = [1, 1]} : vector<2x128xf32> to vector<2x32xf32>
    %100 = vector.extract_strided_slice %97 {offsets = [0, 32], sizes = [2, 32], strides = [1, 1]} : vector<2x128xf32> to vector<2x32xf32>
    %101 = vector.extract_strided_slice %98 {offsets = [0, 64], sizes = [2, 32], strides = [1, 1]} : vector<2x128xf32> to vector<2x32xf32>
    %102 = vector.extract_strided_slice %97 {offsets = [0, 96], sizes = [2, 32], strides = [1, 1]} : vector<2x128xf32> to vector<2x32xf32>
    %103 = arith.mulf %100, %59 : vector<2x32xf32>
    %104 = arith.mulf %99, %101 : vector<2x32xf32>
    %105 = arith.addf %103, %104 : vector<2x32xf32>
    %106 = math.tanh %105 : vector<2x32xf32>
    %107 = arith.mulf %102, %106 : vector<2x32xf32>
    %c2_34 = arith.constant 2 : index
    %c0_35 = arith.constant 0 : index
    %108 = vector.load %arg5[%c2_34, %c0_35] : memref<16x32xf32, #tpu.memory_space<vmem>>, vector<2x32xf32>
    tpu.vector_store %arg5[%c2_34, %c0_35], %107 {strides = array<i32>} : memref<16x32xf32, #tpu.memory_space<vmem>>, vector<2x32xf32>,
    %c4 = arith.constant 4 : index
    %c0_36 = arith.constant 0 : index
    %109 = vector.load %arg4[%c4, %c0_36] : memref<16x128xf32, #tpu.memory_space<vmem>>, vector<2x128xf32>
    %110 = arith.truncf %83 : vector<2x32xf32> to vector<2x32xbf16>
    %cst_37 = arith.constant dense<0.000000e+00> : vector<2x128xf32>
    %111 = tpu.matmul %110, %10, %cst_37 {dimension_numbers = #tpu.dot_dimension_numbers<[1], [0], [0], [1], [0, 0, 1, 1], [], []>} : vector<2x32xbf16>, vector<32x128xbf16>, vector<2x128xf32> -> vector<2x128xf32>
    %112 = arith.addf %109, %111 : vector<2x128xf32>
    %cst_38 = arith.constant 5.000000e-01 : f32
    %113 = vector.broadcast %cst_38 : f32 to vector<2x128xf32>
    %114 = arith.mulf %113, %112 : vector<2x128xf32>
    %115 = math.tanh %114 : vector<2x128xf32>
    %cst_39 = arith.constant 5.000000e-01 : f32
    %116 = vector.broadcast %cst_39 : f32 to vector<2x128xf32>
    %117 = arith.mulf %116, %115 : vector<2x128xf32>
    %cst_40 = arith.constant 5.000000e-01 : f32
    %118 = vector.broadcast %cst_40 : f32 to vector<2x128xf32>
    %119 = arith.addf %117, %118 : vector<2x128xf32>
    %120 = math.tanh %112 : vector<2x128xf32>
    %121 = vector.extract_strided_slice %119 {offsets = [0, 0], sizes = [2, 32], strides = [1, 1]} : vector<2x128xf32> to vector<2x32xf32>
    %122 = vector.extract_strided_slice %119 {offsets = [0, 32], sizes = [2, 32], strides = [1, 1]} : vector<2x128xf32> to vector<2x32xf32>
    %123 = vector.extract_strided_slice %120 {offsets = [0, 64], sizes = [2, 32], strides = [1, 1]} : vector<2x128xf32> to vector<2x32xf32>
    %124 = vector.extract_strided_slice %119 {offsets = [0, 96], sizes = [2, 32], strides = [1, 1]} : vector<2x128xf32> to vector<2x32xf32>
    %125 = arith.mulf %122, %81 : vector<2x32xf32>
    %126 = arith.mulf %121, %123 : vector<2x32xf32>
    %127 = arith.addf %125, %126 : vector<2x32xf32>
    %128 = math.tanh %127 : vector<2x32xf32>
    %129 = arith.mulf %124, %128 : vector<2x32xf32>
    %130 = arith.truncf %129 : vector<2x32xf32> to vector<2x32xbf16>
    %cst_41 = arith.constant dense<0.000000e+00> : vector<2x128xf32>
    %131 = tpu.matmul %130, %14, %cst_41 {dimension_numbers = #tpu.dot_dimension_numbers<[1], [0], [0], [1], [0, 0, 1, 1], [], []>} : vector<2x32xbf16>, vector<32x128xbf16>, vector<2x128xf32> -> vector<2x128xf32>
    %132 = vector.broadcast %15 : vector<1x128xf32> to vector<2x128xf32>
    %133 = arith.addf %132, %131 : vector<2x128xf32>
    %134 = arith.truncf %107 : vector<2x32xf32> to vector<2x32xbf16>
    %cst_42 = arith.constant dense<0.000000e+00> : vector<2x128xf32>
    %135 = tpu.matmul %134, %12, %cst_42 {dimension_numbers = #tpu.dot_dimension_numbers<[1], [0], [0], [1], [0, 0, 1, 1], [], []>} : vector<2x32xbf16>, vector<32x128xbf16>, vector<2x128xf32> -> vector<2x128xf32>
    %136 = arith.addf %133, %135 : vector<2x128xf32>
    %cst_43 = arith.constant 5.000000e-01 : f32
    %137 = vector.broadcast %cst_43 : f32 to vector<2x128xf32>
    %138 = arith.mulf %137, %136 : vector<2x128xf32>
    %139 = math.tanh %138 : vector<2x128xf32>
    %cst_44 = arith.constant 5.000000e-01 : f32
    %140 = vector.broadcast %cst_44 : f32 to vector<2x128xf32>
    %141 = arith.mulf %140, %139 : vector<2x128xf32>
    %cst_45 = arith.constant 5.000000e-01 : f32
    %142 = vector.broadcast %cst_45 : f32 to vector<2x128xf32>
    %143 = arith.addf %141, %142 : vector<2x128xf32>
    %144 = math.tanh %136 : vector<2x128xf32>
    %145 = vector.extract_strided_slice %143 {offsets = [0, 0], sizes = [2, 32], strides = [1, 1]} : vector<2x128xf32> to vector<2x32xf32>
    %146 = vector.extract_strided_slice %143 {offsets = [0, 32], sizes = [2, 32], strides = [1, 1]} : vector<2x128xf32> to vector<2x32xf32>
    %147 = vector.extract_strided_slice %144 {offsets = [0, 64], sizes = [2, 32], strides = [1, 1]} : vector<2x128xf32> to vector<2x32xf32>
    %148 = vector.extract_strided_slice %143 {offsets = [0, 96], sizes = [2, 32], strides = [1, 1]} : vector<2x128xf32> to vector<2x32xf32>
    %149 = arith.mulf %146, %105 : vector<2x32xf32>
    %150 = arith.mulf %145, %147 : vector<2x32xf32>
    %151 = arith.addf %149, %150 : vector<2x32xf32>
    %152 = math.tanh %151 : vector<2x32xf32>
    %153 = arith.mulf %148, %152 : vector<2x32xf32>
    %c4_46 = arith.constant 4 : index
    %c0_47 = arith.constant 0 : index
    %154 = vector.load %arg5[%c4_46, %c0_47] : memref<16x32xf32, #tpu.memory_space<vmem>>, vector<2x32xf32>
    tpu.vector_store %arg5[%c4_46, %c0_47], %153 {strides = array<i32>} : memref<16x32xf32, #tpu.memory_space<vmem>>, vector<2x32xf32>,
    %c6 = arith.constant 6 : index
    %c0_48 = arith.constant 0 : index
    %155 = vector.load %arg4[%c6, %c0_48] : memref<16x128xf32, #tpu.memory_space<vmem>>, vector<2x128xf32>
    %156 = arith.truncf %129 : vector<2x32xf32> to vector<2x32xbf16>
    %cst_49 = arith.constant dense<0.000000e+00> : vector<2x128xf32>
    %157 = tpu.matmul %156, %10, %cst_49 {dimension_numbers = #tpu.dot_dimension_numbers<[1], [0], [0], [1], [0, 0, 1, 1], [], []>} : vector<2x32xbf16>, vector<32x128xbf16>, vector<2x128xf32> -> vector<2x128xf32>
    %158 = arith.addf %155, %157 : vector<2x128xf32>
    %cst_50 = arith.constant 5.000000e-01 : f32
    %159 = vector.broadcast %cst_50 : f32 to vector<2x128xf32>
    %160 = arith.mulf %159, %158 : vector<2x128xf32>
    %161 = math.tanh %160 : vector<2x128xf32>
    %cst_51 = arith.constant 5.000000e-01 : f32
    %162 = vector.broadcast %cst_51 : f32 to vector<2x128xf32>
    %163 = arith.mulf %162, %161 : vector<2x128xf32>
    %cst_52 = arith.constant 5.000000e-01 : f32
    %164 = vector.broadcast %cst_52 : f32 to vector<2x128xf32>
    %165 = arith.addf %163, %164 : vector<2x128xf32>
    %166 = math.tanh %158 : vector<2x128xf32>
    %167 = vector.extract_strided_slice %165 {offsets = [0, 0], sizes = [2, 32], strides = [1, 1]} : vector<2x128xf32> to vector<2x32xf32>
    %168 = vector.extract_strided_slice %165 {offsets = [0, 32], sizes = [2, 32], strides = [1, 1]} : vector<2x128xf32> to vector<2x32xf32>
    %169 = vector.extract_strided_slice %166 {offsets = [0, 64], sizes = [2, 32], strides = [1, 1]} : vector<2x128xf32> to vector<2x32xf32>
    %170 = vector.extract_strided_slice %165 {offsets = [0, 96], sizes = [2, 32], strides = [1, 1]} : vector<2x128xf32> to vector<2x32xf32>
    %171 = arith.mulf %168, %127 : vector<2x32xf32>
    %172 = arith.mulf %167, %169 : vector<2x32xf32>
    %173 = arith.addf %171, %172 : vector<2x32xf32>
    %174 = math.tanh %173 : vector<2x32xf32>
    %175 = arith.mulf %170, %174 : vector<2x32xf32>
    %176 = arith.truncf %175 : vector<2x32xf32> to vector<2x32xbf16>
    %cst_53 = arith.constant dense<0.000000e+00> : vector<2x128xf32>
    %177 = tpu.matmul %176, %14, %cst_53 {dimension_numbers = #tpu.dot_dimension_numbers<[1], [0], [0], [1], [0, 0, 1, 1], [], []>} : vector<2x32xbf16>, vector<32x128xbf16>, vector<2x128xf32> -> vector<2x128xf32>
    %178 = vector.broadcast %15 : vector<1x128xf32> to vector<2x128xf32>
    %179 = arith.addf %178, %177 : vector<2x128xf32>
    %180 = arith.truncf %153 : vector<2x32xf32> to vector<2x32xbf16>
    %cst_54 = arith.constant dense<0.000000e+00> : vector<2x128xf32>
    %181 = tpu.matmul %180, %12, %cst_54 {dimension_numbers = #tpu.dot_dimension_numbers<[1], [0], [0], [1], [0, 0, 1, 1], [], []>} : vector<2x32xbf16>, vector<32x128xbf16>, vector<2x128xf32> -> vector<2x128xf32>
    %182 = arith.addf %179, %181 : vector<2x128xf32>
    %cst_55 = arith.constant 5.000000e-01 : f32
    %183 = vector.broadcast %cst_55 : f32 to vector<2x128xf32>
    %184 = arith.mulf %183, %182 : vector<2x128xf32>
    %185 = math.tanh %184 : vector<2x128xf32>
    %cst_56 = arith.constant 5.000000e-01 : f32
    %186 = vector.broadcast %cst_56 : f32 to vector<2x128xf32>
    %187 = arith.mulf %186, %185 : vector<2x128xf32>
    %cst_57 = arith.constant 5.000000e-01 : f32
    %188 = vector.broadcast %cst_57 : f32 to vector<2x128xf32>
    %189 = arith.addf %187, %188 : vector<2x128xf32>
    %190 = math.tanh %182 : vector<2x128xf32>
    %191 = vector.extract_strided_slice %189 {offsets = [0, 0], sizes = [2, 32], strides = [1, 1]} : vector<2x128xf32> to vector<2x32xf32>
    %192 = vector.extract_strided_slice %189 {offsets = [0, 32], sizes = [2, 32], strides = [1, 1]} : vector<2x128xf32> to vector<2x32xf32>
    %193 = vector.extract_strided_slice %190 {offsets = [0, 64], sizes = [2, 32], strides = [1, 1]} : vector<2x128xf32> to vector<2x32xf32>
    %194 = vector.extract_strided_slice %189 {offsets = [0, 96], sizes = [2, 32], strides = [1, 1]} : vector<2x128xf32> to vector<2x32xf32>
    %195 = arith.mulf %192, %151 : vector<2x32xf32>
    %196 = arith.mulf %191, %193 : vector<2x32xf32>
    %197 = arith.addf %195, %196 : vector<2x32xf32>
    %198 = math.tanh %197 : vector<2x32xf32>
    %199 = arith.mulf %194, %198 : vector<2x32xf32>
    %c6_58 = arith.constant 6 : index
    %c0_59 = arith.constant 0 : index
    %200 = vector.load %arg5[%c6_58, %c0_59] : memref<16x32xf32, #tpu.memory_space<vmem>>, vector<2x32xf32>
    tpu.vector_store %arg5[%c6_58, %c0_59], %199 {strides = array<i32>} : memref<16x32xf32, #tpu.memory_space<vmem>>, vector<2x32xf32>,
    %c8 = arith.constant 8 : index
    %c0_60 = arith.constant 0 : index
    %201 = vector.load %arg4[%c8, %c0_60] : memref<16x128xf32, #tpu.memory_space<vmem>>, vector<2x128xf32>
    %202 = arith.truncf %175 : vector<2x32xf32> to vector<2x32xbf16>
    %cst_61 = arith.constant dense<0.000000e+00> : vector<2x128xf32>
    %203 = tpu.matmul %202, %10, %cst_61 {dimension_numbers = #tpu.dot_dimension_numbers<[1], [0], [0], [1], [0, 0, 1, 1], [], []>} : vector<2x32xbf16>, vector<32x128xbf16>, vector<2x128xf32> -> vector<2x128xf32>
    %204 = arith.addf %201, %203 : vector<2x128xf32>
    %cst_62 = arith.constant 5.000000e-01 : f32
    %205 = vector.broadcast %cst_62 : f32 to vector<2x128xf32>
    %206 = arith.mulf %205, %204 : vector<2x128xf32>
    %207 = math.tanh %206 : vector<2x128xf32>
    %cst_63 = arith.constant 5.000000e-01 : f32
    %208 = vector.broadcast %cst_63 : f32 to vector<2x128xf32>
    %209 = arith.mulf %208, %207 : vector<2x128xf32>
    %cst_64 = arith.constant 5.000000e-01 : f32
    %210 = vector.broadcast %cst_64 : f32 to vector<2x128xf32>
    %211 = arith.addf %209, %210 : vector<2x128xf32>
    %212 = math.tanh %204 : vector<2x128xf32>
    %213 = vector.extract_strided_slice %211 {offsets = [0, 0], sizes = [2, 32], strides = [1, 1]} : vector<2x128xf32> to vector<2x32xf32>
    %214 = vector.extract_strided_slice %211 {offsets = [0, 32], sizes = [2, 32], strides = [1, 1]} : vector<2x128xf32> to vector<2x32xf32>
    %215 = vector.extract_strided_slice %212 {offsets = [0, 64], sizes = [2, 32], strides = [1, 1]} : vector<2x128xf32> to vector<2x32xf32>
    %216 = vector.extract_strided_slice %211 {offsets = [0, 96], sizes = [2, 32], strides = [1, 1]} : vector<2x128xf32> to vector<2x32xf32>
    %217 = arith.mulf %214, %173 : vector<2x32xf32>
    %218 = arith.mulf %213, %215 : vector<2x32xf32>
    %219 = arith.addf %217, %218 : vector<2x32xf32>
    %220 = math.tanh %219 : vector<2x32xf32>
    %221 = arith.mulf %216, %220 : vector<2x32xf32>
    %222 = arith.truncf %221 : vector<2x32xf32> to vector<2x32xbf16>
    %cst_65 = arith.constant dense<0.000000e+00> : vector<2x128xf32>
    %223 = tpu.matmul %222, %14, %cst_65 {dimension_numbers = #tpu.dot_dimension_numbers<[1], [0], [0], [1], [0, 0, 1, 1], [], []>} : vector<2x32xbf16>, vector<32x128xbf16>, vector<2x128xf32> -> vector<2x128xf32>
    %224 = vector.broadcast %15 : vector<1x128xf32> to vector<2x128xf32>
    %225 = arith.addf %224, %223 : vector<2x128xf32>
    %226 = arith.truncf %199 : vector<2x32xf32> to vector<2x32xbf16>
    %cst_66 = arith.constant dense<0.000000e+00> : vector<2x128xf32>
    %227 = tpu.matmul %226, %12, %cst_66 {dimension_numbers = #tpu.dot_dimension_numbers<[1], [0], [0], [1], [0, 0, 1, 1], [], []>} : vector<2x32xbf16>, vector<32x128xbf16>, vector<2x128xf32> -> vector<2x128xf32>
    %228 = arith.addf %225, %227 : vector<2x128xf32>
    %cst_67 = arith.constant 5.000000e-01 : f32
    %229 = vector.broadcast %cst_67 : f32 to vector<2x128xf32>
    %230 = arith.mulf %229, %228 : vector<2x128xf32>
    %231 = math.tanh %230 : vector<2x128xf32>
    %cst_68 = arith.constant 5.000000e-01 : f32
    %232 = vector.broadcast %cst_68 : f32 to vector<2x128xf32>
    %233 = arith.mulf %232, %231 : vector<2x128xf32>
    %cst_69 = arith.constant 5.000000e-01 : f32
    %234 = vector.broadcast %cst_69 : f32 to vector<2x128xf32>
    %235 = arith.addf %233, %234 : vector<2x128xf32>
    %236 = math.tanh %228 : vector<2x128xf32>
    %237 = vector.extract_strided_slice %235 {offsets = [0, 0], sizes = [2, 32], strides = [1, 1]} : vector<2x128xf32> to vector<2x32xf32>
    %238 = vector.extract_strided_slice %235 {offsets = [0, 32], sizes = [2, 32], strides = [1, 1]} : vector<2x128xf32> to vector<2x32xf32>
    %239 = vector.extract_strided_slice %236 {offsets = [0, 64], sizes = [2, 32], strides = [1, 1]} : vector<2x128xf32> to vector<2x32xf32>
    %240 = vector.extract_strided_slice %235 {offsets = [0, 96], sizes = [2, 32], strides = [1, 1]} : vector<2x128xf32> to vector<2x32xf32>
    %241 = arith.mulf %238, %197 : vector<2x32xf32>
    %242 = arith.mulf %237, %239 : vector<2x32xf32>
    %243 = arith.addf %241, %242 : vector<2x32xf32>
    %244 = math.tanh %243 : vector<2x32xf32>
    %245 = arith.mulf %240, %244 : vector<2x32xf32>
    %c8_70 = arith.constant 8 : index
    %c0_71 = arith.constant 0 : index
    %246 = vector.load %arg5[%c8_70, %c0_71] : memref<16x32xf32, #tpu.memory_space<vmem>>, vector<2x32xf32>
    tpu.vector_store %arg5[%c8_70, %c0_71], %245 {strides = array<i32>} : memref<16x32xf32, #tpu.memory_space<vmem>>, vector<2x32xf32>,
    %c10 = arith.constant 10 : index
    %c0_72 = arith.constant 0 : index
    %247 = vector.load %arg4[%c10, %c0_72] : memref<16x128xf32, #tpu.memory_space<vmem>>, vector<2x128xf32>
    %248 = arith.truncf %221 : vector<2x32xf32> to vector<2x32xbf16>
    %cst_73 = arith.constant dense<0.000000e+00> : vector<2x128xf32>
    %249 = tpu.matmul %248, %10, %cst_73 {dimension_numbers = #tpu.dot_dimension_numbers<[1], [0], [0], [1], [0, 0, 1, 1], [], []>} : vector<2x32xbf16>, vector<32x128xbf16>, vector<2x128xf32> -> vector<2x128xf32>
    %250 = arith.addf %247, %249 : vector<2x128xf32>
    %cst_74 = arith.constant 5.000000e-01 : f32
    %251 = vector.broadcast %cst_74 : f32 to vector<2x128xf32>
    %252 = arith.mulf %251, %250 : vector<2x128xf32>
    %253 = math.tanh %252 : vector<2x128xf32>
    %cst_75 = arith.constant 5.000000e-01 : f32
    %254 = vector.broadcast %cst_75 : f32 to vector<2x128xf32>
    %255 = arith.mulf %254, %253 : vector<2x128xf32>
    %cst_76 = arith.constant 5.000000e-01 : f32
    %256 = vector.broadcast %cst_76 : f32 to vector<2x128xf32>
    %257 = arith.addf %255, %256 : vector<2x128xf32>
    %258 = math.tanh %250 : vector<2x128xf32>
    %259 = vector.extract_strided_slice %257 {offsets = [0, 0], sizes = [2, 32], strides = [1, 1]} : vector<2x128xf32> to vector<2x32xf32>
    %260 = vector.extract_strided_slice %257 {offsets = [0, 32], sizes = [2, 32], strides = [1, 1]} : vector<2x128xf32> to vector<2x32xf32>
    %261 = vector.extract_strided_slice %258 {offsets = [0, 64], sizes = [2, 32], strides = [1, 1]} : vector<2x128xf32> to vector<2x32xf32>
    %262 = vector.extract_strided_slice %257 {offsets = [0, 96], sizes = [2, 32], strides = [1, 1]} : vector<2x128xf32> to vector<2x32xf32>
    %263 = arith.mulf %260, %219 : vector<2x32xf32>
    %264 = arith.mulf %259, %261 : vector<2x32xf32>
    %265 = arith.addf %263, %264 : vector<2x32xf32>
    %266 = math.tanh %265 : vector<2x32xf32>
    %267 = arith.mulf %262, %266 : vector<2x32xf32>
    %268 = arith.truncf %267 : vector<2x32xf32> to vector<2x32xbf16>
    %cst_77 = arith.constant dense<0.000000e+00> : vector<2x128xf32>
    %269 = tpu.matmul %268, %14, %cst_77 {dimension_numbers = #tpu.dot_dimension_numbers<[1], [0], [0], [1], [0, 0, 1, 1], [], []>} : vector<2x32xbf16>, vector<32x128xbf16>, vector<2x128xf32> -> vector<2x128xf32>
    %270 = vector.broadcast %15 : vector<1x128xf32> to vector<2x128xf32>
    %271 = arith.addf %270, %269 : vector<2x128xf32>
    %272 = arith.truncf %245 : vector<2x32xf32> to vector<2x32xbf16>
    %cst_78 = arith.constant dense<0.000000e+00> : vector<2x128xf32>
    %273 = tpu.matmul %272, %12, %cst_78 {dimension_numbers = #tpu.dot_dimension_numbers<[1], [0], [0], [1], [0, 0, 1, 1], [], []>} : vector<2x32xbf16>, vector<32x128xbf16>, vector<2x128xf32> -> vector<2x128xf32>
    %274 = arith.addf %271, %273 : vector<2x128xf32>
    %cst_79 = arith.constant 5.000000e-01 : f32
    %275 = vector.broadcast %cst_79 : f32 to vector<2x128xf32>
    %276 = arith.mulf %275, %274 : vector<2x128xf32>
    %277 = math.tanh %276 : vector<2x128xf32>
    %cst_80 = arith.constant 5.000000e-01 : f32
    %278 = vector.broadcast %cst_80 : f32 to vector<2x128xf32>
    %279 = arith.mulf %278, %277 : vector<2x128xf32>
    %cst_81 = arith.constant 5.000000e-01 : f32
    %280 = vector.broadcast %cst_81 : f32 to vector<2x128xf32>
    %281 = arith.addf %279, %280 : vector<2x128xf32>
    %282 = math.tanh %274 : vector<2x128xf32>
    %283 = vector.extract_strided_slice %281 {offsets = [0, 0], sizes = [2, 32], strides = [1, 1]} : vector<2x128xf32> to vector<2x32xf32>
    %284 = vector.extract_strided_slice %281 {offsets = [0, 32], sizes = [2, 32], strides = [1, 1]} : vector<2x128xf32> to vector<2x32xf32>
    %285 = vector.extract_strided_slice %282 {offsets = [0, 64], sizes = [2, 32], strides = [1, 1]} : vector<2x128xf32> to vector<2x32xf32>
    %286 = vector.extract_strided_slice %281 {offsets = [0, 96], sizes = [2, 32], strides = [1, 1]} : vector<2x128xf32> to vector<2x32xf32>
    %287 = arith.mulf %284, %243 : vector<2x32xf32>
    %288 = arith.mulf %283, %285 : vector<2x32xf32>
    %289 = arith.addf %287, %288 : vector<2x32xf32>
    %290 = math.tanh %289 : vector<2x32xf32>
    %291 = arith.mulf %286, %290 : vector<2x32xf32>
    %c10_82 = arith.constant 10 : index
    %c0_83 = arith.constant 0 : index
    %292 = vector.load %arg5[%c10_82, %c0_83] : memref<16x32xf32, #tpu.memory_space<vmem>>, vector<2x32xf32>
    tpu.vector_store %arg5[%c10_82, %c0_83], %291 {strides = array<i32>} : memref<16x32xf32, #tpu.memory_space<vmem>>, vector<2x32xf32>,
    %c12 = arith.constant 12 : index
    %c0_84 = arith.constant 0 : index
    %293 = vector.load %arg4[%c12, %c0_84] : memref<16x128xf32, #tpu.memory_space<vmem>>, vector<2x128xf32>
    %294 = arith.truncf %267 : vector<2x32xf32> to vector<2x32xbf16>
    %cst_85 = arith.constant dense<0.000000e+00> : vector<2x128xf32>
    %295 = tpu.matmul %294, %10, %cst_85 {dimension_numbers = #tpu.dot_dimension_numbers<[1], [0], [0], [1], [0, 0, 1, 1], [], []>} : vector<2x32xbf16>, vector<32x128xbf16>, vector<2x128xf32> -> vector<2x128xf32>
    %296 = arith.addf %293, %295 : vector<2x128xf32>
    %cst_86 = arith.constant 5.000000e-01 : f32
    %297 = vector.broadcast %cst_86 : f32 to vector<2x128xf32>
    %298 = arith.mulf %297, %296 : vector<2x128xf32>
    %299 = math.tanh %298 : vector<2x128xf32>
    %cst_87 = arith.constant 5.000000e-01 : f32
    %300 = vector.broadcast %cst_87 : f32 to vector<2x128xf32>
    %301 = arith.mulf %300, %299 : vector<2x128xf32>
    %cst_88 = arith.constant 5.000000e-01 : f32
    %302 = vector.broadcast %cst_88 : f32 to vector<2x128xf32>
    %303 = arith.addf %301, %302 : vector<2x128xf32>
    %304 = math.tanh %296 : vector<2x128xf32>
    %305 = vector.extract_strided_slice %303 {offsets = [0, 0], sizes = [2, 32], strides = [1, 1]} : vector<2x128xf32> to vector<2x32xf32>
    %306 = vector.extract_strided_slice %303 {offsets = [0, 32], sizes = [2, 32], strides = [1, 1]} : vector<2x128xf32> to vector<2x32xf32>
    %307 = vector.extract_strided_slice %304 {offsets = [0, 64], sizes = [2, 32], strides = [1, 1]} : vector<2x128xf32> to vector<2x32xf32>
    %308 = vector.extract_strided_slice %303 {offsets = [0, 96], sizes = [2, 32], strides = [1, 1]} : vector<2x128xf32> to vector<2x32xf32>
    %309 = arith.mulf %306, %265 : vector<2x32xf32>
    %310 = arith.mulf %305, %307 : vector<2x32xf32>
    %311 = arith.addf %309, %310 : vector<2x32xf32>
    %312 = math.tanh %311 : vector<2x32xf32>
    %313 = arith.mulf %308, %312 : vector<2x32xf32>
    %314 = arith.truncf %313 : vector<2x32xf32> to vector<2x32xbf16>
    %cst_89 = arith.constant dense<0.000000e+00> : vector<2x128xf32>
    %315 = tpu.matmul %314, %14, %cst_89 {dimension_numbers = #tpu.dot_dimension_numbers<[1], [0], [0], [1], [0, 0, 1, 1], [], []>} : vector<2x32xbf16>, vector<32x128xbf16>, vector<2x128xf32> -> vector<2x128xf32>
    %316 = vector.broadcast %15 : vector<1x128xf32> to vector<2x128xf32>
    %317 = arith.addf %316, %315 : vector<2x128xf32>
    %318 = arith.truncf %291 : vector<2x32xf32> to vector<2x32xbf16>
    %cst_90 = arith.constant dense<0.000000e+00> : vector<2x128xf32>
    %319 = tpu.matmul %318, %12, %cst_90 {dimension_numbers = #tpu.dot_dimension_numbers<[1], [0], [0], [1], [0, 0, 1, 1], [], []>} : vector<2x32xbf16>, vector<32x128xbf16>, vector<2x128xf32> -> vector<2x128xf32>
    %320 = arith.addf %317, %319 : vector<2x128xf32>
    %cst_91 = arith.constant 5.000000e-01 : f32
    %321 = vector.broadcast %cst_91 : f32 to vector<2x128xf32>
    %322 = arith.mulf %321, %320 : vector<2x128xf32>
    %323 = math.tanh %322 : vector<2x128xf32>
    %cst_92 = arith.constant 5.000000e-01 : f32
    %324 = vector.broadcast %cst_92 : f32 to vector<2x128xf32>
    %325 = arith.mulf %324, %323 : vector<2x128xf32>
    %cst_93 = arith.constant 5.000000e-01 : f32
    %326 = vector.broadcast %cst_93 : f32 to vector<2x128xf32>
    %327 = arith.addf %325, %326 : vector<2x128xf32>
    %328 = math.tanh %320 : vector<2x128xf32>
    %329 = vector.extract_strided_slice %327 {offsets = [0, 0], sizes = [2, 32], strides = [1, 1]} : vector<2x128xf32> to vector<2x32xf32>
    %330 = vector.extract_strided_slice %327 {offsets = [0, 32], sizes = [2, 32], strides = [1, 1]} : vector<2x128xf32> to vector<2x32xf32>
    %331 = vector.extract_strided_slice %328 {offsets = [0, 64], sizes = [2, 32], strides = [1, 1]} : vector<2x128xf32> to vector<2x32xf32>
    %332 = vector.extract_strided_slice %327 {offsets = [0, 96], sizes = [2, 32], strides = [1, 1]} : vector<2x128xf32> to vector<2x32xf32>
    %333 = arith.mulf %330, %289 : vector<2x32xf32>
    %334 = arith.mulf %329, %331 : vector<2x32xf32>
    %335 = arith.addf %333, %334 : vector<2x32xf32>
    %336 = math.tanh %335 : vector<2x32xf32>
    %337 = arith.mulf %332, %336 : vector<2x32xf32>
    %c12_94 = arith.constant 12 : index
    %c0_95 = arith.constant 0 : index
    %338 = vector.load %arg5[%c12_94, %c0_95] : memref<16x32xf32, #tpu.memory_space<vmem>>, vector<2x32xf32>
    tpu.vector_store %arg5[%c12_94, %c0_95], %337 {strides = array<i32>} : memref<16x32xf32, #tpu.memory_space<vmem>>, vector<2x32xf32>,
    %c14 = arith.constant 14 : index
    %c0_96 = arith.constant 0 : index
    %339 = vector.load %arg4[%c14, %c0_96] : memref<16x128xf32, #tpu.memory_space<vmem>>, vector<2x128xf32>
    %340 = arith.truncf %313 : vector<2x32xf32> to vector<2x32xbf16>
    %cst_97 = arith.constant dense<0.000000e+00> : vector<2x128xf32>
    %341 = tpu.matmul %340, %10, %cst_97 {dimension_numbers = #tpu.dot_dimension_numbers<[1], [0], [0], [1], [0, 0, 1, 1], [], []>} : vector<2x32xbf16>, vector<32x128xbf16>, vector<2x128xf32> -> vector<2x128xf32>
    %342 = arith.addf %339, %341 : vector<2x128xf32>
    %cst_98 = arith.constant 5.000000e-01 : f32
    %343 = vector.broadcast %cst_98 : f32 to vector<2x128xf32>
    %344 = arith.mulf %343, %342 : vector<2x128xf32>
    %345 = math.tanh %344 : vector<2x128xf32>
    %cst_99 = arith.constant 5.000000e-01 : f32
    %346 = vector.broadcast %cst_99 : f32 to vector<2x128xf32>
    %347 = arith.mulf %346, %345 : vector<2x128xf32>
    %cst_100 = arith.constant 5.000000e-01 : f32
    %348 = vector.broadcast %cst_100 : f32 to vector<2x128xf32>
    %349 = arith.addf %347, %348 : vector<2x128xf32>
    %350 = math.tanh %342 : vector<2x128xf32>
    %351 = vector.extract_strided_slice %349 {offsets = [0, 0], sizes = [2, 32], strides = [1, 1]} : vector<2x128xf32> to vector<2x32xf32>
    %352 = vector.extract_strided_slice %349 {offsets = [0, 32], sizes = [2, 32], strides = [1, 1]} : vector<2x128xf32> to vector<2x32xf32>
    %353 = vector.extract_strided_slice %350 {offsets = [0, 64], sizes = [2, 32], strides = [1, 1]} : vector<2x128xf32> to vector<2x32xf32>
    %354 = vector.extract_strided_slice %349 {offsets = [0, 96], sizes = [2, 32], strides = [1, 1]} : vector<2x128xf32> to vector<2x32xf32>
    %355 = arith.mulf %352, %311 : vector<2x32xf32>
    %356 = arith.mulf %351, %353 : vector<2x32xf32>
    %357 = arith.addf %355, %356 : vector<2x32xf32>
    %358 = math.tanh %357 : vector<2x32xf32>
    %359 = arith.mulf %354, %358 : vector<2x32xf32>
    %360 = arith.truncf %359 : vector<2x32xf32> to vector<2x32xbf16>
    %cst_101 = arith.constant dense<0.000000e+00> : vector<2x128xf32>
    %361 = tpu.matmul %360, %14, %cst_101 {dimension_numbers = #tpu.dot_dimension_numbers<[1], [0], [0], [1], [0, 0, 1, 1], [], []>} : vector<2x32xbf16>, vector<32x128xbf16>, vector<2x128xf32> -> vector<2x128xf32>
    %362 = vector.broadcast %15 : vector<1x128xf32> to vector<2x128xf32>
    %363 = arith.addf %362, %361 : vector<2x128xf32>
    %364 = arith.truncf %337 : vector<2x32xf32> to vector<2x32xbf16>
    %cst_102 = arith.constant dense<0.000000e+00> : vector<2x128xf32>
    %365 = tpu.matmul %364, %12, %cst_102 {dimension_numbers = #tpu.dot_dimension_numbers<[1], [0], [0], [1], [0, 0, 1, 1], [], []>} : vector<2x32xbf16>, vector<32x128xbf16>, vector<2x128xf32> -> vector<2x128xf32>
    %366 = arith.addf %363, %365 : vector<2x128xf32>
    %cst_103 = arith.constant 5.000000e-01 : f32
    %367 = vector.broadcast %cst_103 : f32 to vector<2x128xf32>
    %368 = arith.mulf %367, %366 : vector<2x128xf32>
    %369 = math.tanh %368 : vector<2x128xf32>
    %cst_104 = arith.constant 5.000000e-01 : f32
    %370 = vector.broadcast %cst_104 : f32 to vector<2x128xf32>
    %371 = arith.mulf %370, %369 : vector<2x128xf32>
    %cst_105 = arith.constant 5.000000e-01 : f32
    %372 = vector.broadcast %cst_105 : f32 to vector<2x128xf32>
    %373 = arith.addf %371, %372 : vector<2x128xf32>
    %374 = math.tanh %366 : vector<2x128xf32>
    %375 = vector.extract_strided_slice %373 {offsets = [0, 0], sizes = [2, 32], strides = [1, 1]} : vector<2x128xf32> to vector<2x32xf32>
    %376 = vector.extract_strided_slice %373 {offsets = [0, 32], sizes = [2, 32], strides = [1, 1]} : vector<2x128xf32> to vector<2x32xf32>
    %377 = vector.extract_strided_slice %374 {offsets = [0, 64], sizes = [2, 32], strides = [1, 1]} : vector<2x128xf32> to vector<2x32xf32>
    %378 = vector.extract_strided_slice %373 {offsets = [0, 96], sizes = [2, 32], strides = [1, 1]} : vector<2x128xf32> to vector<2x32xf32>
    %379 = arith.mulf %376, %335 : vector<2x32xf32>
    %380 = arith.mulf %375, %377 : vector<2x32xf32>
    %381 = arith.addf %379, %380 : vector<2x32xf32>
    %382 = math.tanh %381 : vector<2x32xf32>
    %383 = arith.mulf %378, %382 : vector<2x32xf32>
    %c14_106 = arith.constant 14 : index
    %c0_107 = arith.constant 0 : index
    %384 = vector.load %arg5[%c14_106, %c0_107] : memref<16x32xf32, #tpu.memory_space<vmem>>, vector<2x32xf32>
    tpu.vector_store %arg5[%c14_106, %c0_107], %383 {strides = array<i32>} : memref<16x32xf32, #tpu.memory_space<vmem>>, vector<2x32xf32>,
    %c0_108 = arith.constant 0 : index
    %c0_109 = arith.constant 0 : index
    %385 = vector.load %arg5[%c0_108, %c0_109] : memref<16x32xf32, #tpu.memory_space<vmem>>, vector<16x32xf32>
    %c0_110 = arith.constant 0 : index
    %c0_111 = arith.constant 0 : index
    %386 = vector.load %arg1[%c0_110, %c0_111] : memref<16x16xf32, #tpu.memory_space<vmem>>, vector<16x16xf32>
    %c144 = arith.constant 144 : index
    %c0_112 = arith.constant 0 : index
    %387 = vector.load %arg2[%c144, %c0_112] : memref<280x128xf32, #tpu.memory_space<vmem>>, vector<16x32xf32>
    %cst_113 = arith.constant dense<0.000000e+00> : vector<16x32xf32>
    %388 = tpu.matmul %386, %387, %cst_113 {dimension_numbers = #tpu.dot_dimension_numbers<[1], [0], [0], [1], [0, 0, 1, 1], [], []>} : vector<16x16xf32>, vector<16x32xf32>, vector<16x32xf32> -> vector<16x32xf32>
    %c160 = arith.constant 160 : index
    %c0_114 = arith.constant 0 : index
    %389 = vector.load %arg2[%c160, %c0_114] : memref<280x128xf32, #tpu.memory_space<vmem>>, vector<1x32xf32>
    %390 = vector.broadcast %389 : vector<1x32xf32> to vector<16x32xf32>
    %391 = arith.addf %388, %390 : vector<16x32xf32>
    %cst_115 = arith.constant 0.000000e+00 : f32
    %392 = vector.broadcast %cst_115 : f32 to vector<16x32xf32>
    %393 = arith.maximumf %391, %392 : vector<16x32xf32>
    %c168 = arith.constant 168 : index
    %c0_116 = arith.constant 0 : index
    %394 = vector.load %arg2[%c168, %c0_116] : memref<280x128xf32, #tpu.memory_space<vmem>>, vector<32x16xf32>
    %cst_117 = arith.constant dense<0.000000e+00> : vector<16x16xf32>
    %395 = tpu.matmul %385, %394, %cst_117 {dimension_numbers = #tpu.dot_dimension_numbers<[1], [0], [0], [1], [0, 0, 1, 1], [], []>} : vector<16x32xf32>, vector<32x16xf32>, vector<16x16xf32> -> vector<16x16xf32>
    %c200 = arith.constant 200 : index
    %c0_118 = arith.constant 0 : index
    %396 = vector.load %arg2[%c200, %c0_118] : memref<280x128xf32, #tpu.memory_space<vmem>>, vector<32x16xf32>
    %cst_119 = arith.constant dense<0.000000e+00> : vector<16x16xf32>
    %397 = tpu.matmul %393, %396, %cst_119 {dimension_numbers = #tpu.dot_dimension_numbers<[1], [0], [0], [1], [0, 0, 1, 1], [], []>} : vector<16x32xf32>, vector<32x16xf32>, vector<16x16xf32> -> vector<16x16xf32>
    %398 = arith.addf %395, %397 : vector<16x16xf32>
    %c232 = arith.constant 232 : index
    %c0_120 = arith.constant 0 : index
    %399 = vector.load %arg2[%c232, %c0_120] : memref<280x128xf32, #tpu.memory_space<vmem>>, vector<1x16xf32>
    %400 = vector.broadcast %399 : vector<1x16xf32> to vector<16x16xf32>
    %401 = arith.addf %398, %400 : vector<16x16xf32>
    %cst_121 = arith.constant 0.000000e+00 : f32
    %402 = vector.broadcast %cst_121 : f32 to vector<16x16xf32>
    %403 = arith.maximumf %401, %402 : vector<16x16xf32>
    %c240 = arith.constant 240 : index
    %c0_122 = arith.constant 0 : index
    %404 = vector.load %arg2[%c240, %c0_122] : memref<280x128xf32, #tpu.memory_space<vmem>>, vector<16x4xf32>
    %cst_123 = arith.constant dense<0.000000e+00> : vector<16x4xf32>
    %405 = tpu.matmul %403, %404, %cst_123 {dimension_numbers = #tpu.dot_dimension_numbers<[1], [0], [0], [1], [0, 0, 1, 1], [], []>} : vector<16x16xf32>, vector<16x4xf32>, vector<16x4xf32> -> vector<16x4xf32>
    %c256 = arith.constant 256 : index
    %c0_124 = arith.constant 0 : index
    %406 = vector.load %arg2[%c256, %c0_124] : memref<280x128xf32, #tpu.memory_space<vmem>>, vector<1x4xf32>
    %407 = vector.broadcast %406 : vector<1x4xf32> to vector<16x4xf32>
    %408 = arith.addf %405, %407 : vector<16x4xf32>
    %cst_125 = arith.constant 0.000000e+00 : f32
    %409 = vector.broadcast %cst_125 : f32 to vector<16x4xf32>
    %410 = arith.maximumf %408, %409 : vector<16x4xf32>
    %c264 = arith.constant 264 : index
    %c0_126 = arith.constant 0 : index
    %411 = vector.load %arg2[%c264, %c0_126] : memref<280x128xf32, #tpu.memory_space<vmem>>, vector<4x1xf32>
    %cst_127 = arith.constant dense<0.000000e+00> : vector<16x1xf32>
    %412 = tpu.matmul %410, %411, %cst_127 {dimension_numbers = #tpu.dot_dimension_numbers<[1], [0], [0], [1], [0, 0, 1, 1], [], []>} : vector<16x4xf32>, vector<4x1xf32>, vector<16x1xf32> -> vector<16x1xf32>
    %c272 = arith.constant 272 : index
    %c0_128 = arith.constant 0 : index
    %413 = vector.load %arg2[%c272, %c0_128] : memref<280x128xf32, #tpu.memory_space<vmem>>, vector<1x1xf32>
    %414 = vector.broadcast %413 : vector<1x1xf32> to vector<16x1xf32>
    %415 = arith.addf %412, %414 : vector<16x1xf32>
    %cst_129 = arith.constant 5.000000e-01 : f32
    %416 = vector.broadcast %cst_129 : f32 to vector<16x1xf32>
    %417 = arith.mulf %416, %415 : vector<16x1xf32>
    %418 = math.tanh %417 : vector<16x1xf32>
    %cst_130 = arith.constant 5.000000e-01 : f32
    %419 = vector.broadcast %cst_130 : f32 to vector<16x1xf32>
    %420 = arith.mulf %419, %418 : vector<16x1xf32>
    %cst_131 = arith.constant 5.000000e-01 : f32
    %421 = vector.broadcast %cst_131 : f32 to vector<16x1xf32>
    %422 = arith.addf %420, %421 : vector<16x1xf32>
    %c0_132 = arith.constant 0 : index
    %c0_133 = arith.constant 0 : index
    %423 = vector.load %arg3[%c0_132, %c0_133] : memref<16x1xf32, #tpu.memory_space<vmem>>, vector<16x1xf32>
    tpu.vector_store %arg3[%c0_132, %c0_133], %422 {strides = array<i32>} : memref<16x1xf32, #tpu.memory_space<vmem>>, vector<16x1xf32>,
    return
  }
}

</mosaic_0001>

<bundles_post_ra>
// kernel: forward.1
= control target key start
LH: loop header
LB: loop body
LE: loop exit
PB: predicated region body
PF: predicated region fallthrough
CT: control target
= control target key end

     0   :  { %v2548_v0 = vmov 0.0   ;;  %vm2549_vm0 = vmmov 0   ;;  %vm29_vm1 = vcmask 261120   ;;  %v2550_v16 = vmov 0   ;;  %s2551_s6 = smov 64   ;;  %s2552_s7 = smov 32   ;;  %s3065_s2 = inlined_call_operand.vmem [shape: f32[280,128], index: 2, kind: input, shape index: {}]   ;;  %s3066_s0 = inlined_call_operand.vmem [shape: f32[16,32], index: 0, kind: input, shape index: {}]   ;;  %s3067_s1 = inlined_call_operand.vmem [shape: f32[16,16], index: 1, kind: input, shape index: {}]   ;;  %s3068_s3 = inlined_call_operand.vmem [shape: f32[16,1], index: 3, kind: output, shape index: {}]  }
   0x1   :  { %2201 = vmatprep.subr.bf16.mxu0 %v2548_v0  ;;  %v20_v1 = vld [vmem:[%s3065_s2 + $0x10] sm:$0xff]  ;;  %v21_v2 = vld [vmem:[%s3065_s2 + $0x18] sm:$0xff]  ;;  %2209 = vmatprep.subr.bf16.mxu1 %v2548_v0  ;;  %v18_v3 = vld [vmem:[%s3065_s2] sm:$0xff]  ;;  %vm1603_vm2 = vcmask 130048   ;;  %vm281_vm3 = vcmask 254976   ;;  %vm1969_vm4 = vcmask 1043456  }
   0x2   :  { %v23_v4 = vpack.c.bf16 %v21_v2, %v20_v1  ;;  %v19_v5 = vld [vmem:[%s3065_s2 + $0x8] sm:$0xff]  ;;  %v78_v6 = vld [vmem:[%s3065_s2 + $0x30] sm:$0xff]  ;;  %v79_v7 = vld [vmem:[%s3065_s2 + $0x38] sm:$0xff]  ;;  %2205 = vmatprep.mubr.msk.bf16.mxu0 %vm2549_vm0, %v2548_v0  ;;  %2213 = vmatprep.mubr.msk.bf16.mxu1 %vm2549_vm0, %v2548_v0  ;;  %vm1962_vm5 = vcmask 31744   ;;  %vm2056_vm6 = vcmask 7168  }
   0x3   :  { %v2597_v8 = vpack.c.bf16 %v79_v7, %v78_v6  ;;  %v76_v9 = vld [vmem:[%s3065_s2 + $0x20] sm:$0xff]  ;;  %v22_v10 = vpack.c.bf16 %v19_v5, %v18_v3  ;;  %v16_v12 = vld [vmem:[%s3066_s0 + $0x8] sm:$0xff]  ;;  %v90_v40 = vld [vmem:[%s3065_s2 + $0x58] sm:$0xff] }
   0x4   :  { %2202 = vmatpush3.bf16.msra.mxu0 %v23_v4  ;;  %v15_v11 = vld [vmem:[%s3066_s0] sm:$0xff]  ;;  %v77_v13 = vld [vmem:[%s3065_s2 + $0x28] sm:$0xff]  ;;  %v84_v42 = vld [vmem:[%s3065_s2 + $0x78] sm:$0xff] }
   0x5   :  { %2203 = vmatprep.subr.bf16.mxu0 %v2548_v0  ;;  %2210 = vmatpush3.bf16.msra.mxu1 %v2597_v8  ;;  %v2613_v14 = vpack.c.bf16 %v77_v13, %v76_v9  ;;  %v17_v15 = vpack.c.bf16 %v16_v12, %v15_v11  ;;  %v2063_v17 = vld [vmem:[%s3065_s2 + $0x40] ss:$0 sm:$0xff]  ;;  %v88_v45 = vld [vmem:[%s3065_s2 + $0x48] sm:$0xff]  ;;  %v89_v46 = vld [vmem:[%s3065_s2 + $0x50] sm:$0xff] }
   0x6   :  { %2211 = vmatprep.subr.bf16.mxu1 %v2548_v0  ;;  %v91_v41 = vld [vmem:[%s3065_s2 + $0x60] sm:$0xff]  ;;  %v82_v48 = vld [vmem:[%s3065_s2 + $0x68] sm:$0xff]  ;;  %v83_v49 = vld [vmem:[%s3065_s2 + $0x70] sm:$0xff]  ;;  %v2661_v50 = vpack.c.bf16 %v89_v46, %v88_v45 }
   0x7   :  { %v2641_v43 = vpack.c.bf16 %v91_v41, %v90_v40  ;;  %v85_v44 = vld [vmem:[%s3065_s2 + $0x80] sm:$0xff]  ;;  %v2665_v51 = vpack.c.bf16 %v83_v49, %v82_v48  ;;  %v2697_v61 = vld [vmem:[%s3065_s2 + $0x88] ss:$0 sm:$0xff] }
   0x8   :  { %2204 = vmatpush3.bf16.msra.mxu0 %v22_v10  ;;  %v2652_v47 = vpack.c.bf16 %v85_v44, %v84_v42 }
   0x9   :  { %2212 = vmatpush3.bf16.msra.mxu1 %v2613_v14  ;;  %2217 = vmatprep.subr.bf16.mxu0 %v2548_v0 }
   0xa   :  { %2225 = vmatprep.subr.bf16.mxu1 %v2548_v0 }
   0xb   :  { %2206 = vmatmul.mubr.msk.bf16.vlgmr.msra.gmra.mxu0 %vm29_vm1, %v17_v15 }
   0xc   :  { %2214 = vmatmul.mubr.bf16.vlgmr.msra.gmra.mxu1 %v2550_v16  ;;  %2221 = vmatprep.mubr.msk.bf16.mxu0 %vm2549_vm0, %v2548_v0 }
   0xd   :  { %2229 = vmatprep.mubr.msk.bf16.mxu1 %vm2549_vm0, %v2548_v0  ;;  %2218 = vmatpush3.bf16.msra.mxu0 %v2641_v43 }
   0xe   :  { %2219 = vmatprep.subr.bf16.mxu0 %v2548_v0  ;;  %2226 = vmatpush3.bf16.msra.mxu1 %v2652_v47 }
   0xf   :  { %2227 = vmatprep.subr.bf16.mxu1 %v2548_v0 }
  0x11   :  { %2220 = vmatpush3.bf16.msra.mxu0 %v2661_v50 }
  0x12   :  { %2228 = vmatpush3.bf16.msra.mxu1 %v2665_v51  ;;  %2233 = vmatprep.subr.bf16.mxu0 %v2548_v0 }
  0x13   :  { %2241 = vmatprep.subr.bf16.mxu1 %v2548_v0 }
  0x15   :  { %2230 = vmatmul.mubr.bf16.vlgmr.msra.gmra.mxu1 %v2550_v16 }
  0x16   :  { %2242 = vmatpush3.bf16.msra.mxu1 %v2641_v43  ;;  %2245 = vmatprep.mubr.msk.bf16.mxu1 %vm2549_vm0, %v2548_v0 }
  0x17   :  { %2243 = vmatprep.subr.bf16.mxu1 %v2548_v0 }
  0x1a   :  { %2244 = vmatpush3.bf16.msra.mxu1 %v2661_v50 }
  0x1b   :  { %2257 = vmatprep.subr.bf16.mxu1 %v2548_v0 }
  0xcb   :  { %v67_v18 = vpop.f32.mrf.mxu0 }
  0xcc   :  { %v68_v19 = vadd.f32 %v2063_v17, %v67_v18  ;;  %v133_v20 = vpop.f32.mrf.mxu1 }
  0xcd   :  { %v2207_v21 = vpop.f32.mrf.mxu0 }
  0xce   :  { %74 = vst [vmem:[#allocation2] sm:$0xff] %v68_v19  ;;  %v2215_v22 = vpop.f32.mrf.mxu1 }
  0xcf   :  { %v70_v23 = vpop.f32.mrf.mxu0 }
  0xd0   :  { %v71_v24 = vadd.f32 %v2063_v17, %v70_v23  ;;  %v136_v25 = vpop.f32.mrf.mxu1 }
  0xd1   :  { %v2208_v26 = vpop.f32.mrf.mxu0 }
  0xd2   :  { %75 = vst [vmem:[#allocation2 + $0x8] sm:$0xff] %v71_v24  ;;  %v2216_v27 = vpop.f32.mrf.mxu1 }
  0xd5   :  { %v95_v28 = vld [vmem:[#allocation2] sm:$0x3]  ;;  %v248_v57 = vpop.f32.mrf.mxu1  ;;  %v283_v5 = vld [vmem:[#allocation2 + $0x2] sm:$0x3] }
  0xd6   :  { %v139_v29 = vadd.f32 %v133_v20, %v95_v28 }
  0xd7   :  { %v2231_v58 = vpop.f32.mrf.mxu1 }
  0xd8   :  { %2447 = vtanh.f32 %v139_v29  ;;  %v140_v31 = vmul.f32 0.5, %v139_v29 }
  0xd9   :  { %v251_v59 = vpop.f32.mrf.mxu1 }
  0xda   :  { %2449 = vtanh.f32 %v140_v31 }
  0xdb   :  { %v2232_v60 = vpop.f32.mrf.mxu1 }
  0xe5   :  { %v2448_v30 = vpop.eup %2447 }
  0xe6   :  { %147 = vrot.lane.b32.xlu0 %v2448_v30, %s2551_s6 }
  0xe7   :  { %v2450_v32 = vpop.eup %2449 }
  0xe8   :  { %v142_v33 = vmul.f32 0.5, %v2450_v32 }
  0xea   :  { %v143_v34 = vadd.f32 0.5, %v142_v33 }
  0xec   :  { %v145_v37 = vmul.f32 0.0, %v143_v34 }
 0x158   :  { %v148_v35 = vpop.permute.xlu0 %147 }
 0x159   :  { %v150_v36 = vmul.f32 %v148_v35, %v143_v34 }
 0x15b   :  { %152 = vrot.lane.b32.xlu0 %v150_v36, %s2552_s7 }
 0x1cd   :  { %v153_v38 = vpop.permute.xlu0 %152 }
 0x1ce   :  { %v2629_v39 = vadd.f32 %v153_v38, %v145_v37 }
 0x1d0   :  { %2451 = vtanh.f32 %v2629_v39 }
 0x1dd   :  { %v2452_v52 = vpop.eup %2451 }
 0x1de   :  { %158 = vrot.lane.b32.xlu1 %v2452_v52, %s2551_s6 }
 0x250   :  { %v159_v53 = vpop.permute.xlu1 %158 }
 0x251   :  { %v161_v54 = vmul.f32 %v159_v53, %v143_v34 }
 0x253   :  { %v162_v55 = vpack.c.bf16 %v161_v54, %v161_v54 }
 0x255   :  { %164 = vrot.lane.b32.xlu1 %v162_v55, %s2552_s7 }
 0x2c7   :  { %v165_v56 = vpop.permute.xlu1 %164 }
 0x2c8   :  { %2222 = vmatmul.mubr.msk.bf16.vlgmr.msra.gmra.mxu0 %vm29_vm1, %v165_v56 }
 0x2c9   :  { %2234 = vmatpush3.bf16.msra.mxu0 %v2597_v8  ;;  %2237 = vmatprep.mubr.msk.bf16.mxu0 %vm2549_vm0, %v2548_v0 }
 0x2ca   :  { %2235 = vmatprep.subr.bf16.mxu0 %v2548_v0 }
 0x2cd   :  { %2236 = vmatpush3.bf16.msra.mxu0 %v2613_v14 }
 0x2ce   :  { %2249 = vmatprep.subr.bf16.mxu0 %v2548_v0 }
 0x2d0   :  { %2238 = vmatmul.mubr.msk.bf16.vlgmr.msra.gmra.mxu0 %vm29_vm1, %v165_v56 }
 0x2d1   :  { %2250 = vmatpush3.bf16.msra.mxu0 %v2652_v47  ;;  %2253 = vmatprep.mubr.msk.bf16.mxu0 %vm2549_vm0, %v2548_v0 }
 0x2d2   :  { %2251 = vmatprep.subr.bf16.mxu0 %v2548_v0 }
 0x2d5   :  { %2252 = vmatpush3.bf16.msra.mxu0 %v2665_v51 }
 0x2d6   :  { %2265 = vmatprep.subr.bf16.mxu0 %v2548_v0 }
 0x388   :  { %v203_v62 = vpop.f32.mrf.mxu0 }
 0x389   :  { %v213_v63 = vadd.f32 %v2697_v61, %v203_v62 }
 0x38a   :  { %v2223_v1 = vpop.f32.mrf.mxu0 }
 0x38b   :  { %v254_v2 = vadd.f32 %v248_v57, %v213_v63  ;;  %v470_v57 = vld [vmem:[#allocation2 + $0x4] sm:$0x3] }
 0x38c   :  { %v206_v3 = vpop.f32.mrf.mxu0 }
 0x38d   :  { %2453 = vtanh.f32 %v254_v2  ;;  %v255_v15 = vmul.f32 0.5, %v254_v2 }
 0x38e   :  { %v2224_v4 = vpop.f32.mrf.mxu0 }
 0x390   :  { %v318_v6 = vpop.f32.mrf.mxu0 }
 0x391   :  { %v324_v7 = vadd.f32 %v318_v6, %v283_v5 }
 0x392   :  { %v2239_v9 = vpop.f32.mrf.mxu0 }
 0x393   :  { %2455 = vtanh.f32 %v324_v7  ;;  %v325_v16 = vmul.f32 0.5, %v324_v7 }
 0x394   :  { %v321_v10 = vpop.f32.mrf.mxu0  ;;  %2457 = vtanh.f32 %v255_v15 }
 0x395   :  { %2459 = vtanh.f32 %v325_v16 }
 0x396   :  { %v2240_v11 = vpop.f32.mrf.mxu0 }
 0x39a   :  { %v2454_v12 = vpop.eup %2453 }
 0x39b   :  { %262 = vrot.lane.b32.xlu1 %v2454_v12, %s2551_s6 }
 0x3a0   :  { %v2456_v13 = vpop.eup %2455 }
 0x3a1   :  { %332 = vrot.lane.b32.xlu0 %v2456_v13, %s2551_s6  ;;  %v2458_v17 = vpop.eup %2457 }
 0x3a2   :  { %v257_v18 = vmul.f32 0.5, %v2458_v17  ;;  %v2460_v19 = vpop.eup %2459 }
 0x3a3   :  { %v327_v23 = vmul.f32 0.5, %v2460_v19 }
 0x3a4   :  { %v258_v20 = vadd.f32 0.5, %v257_v18 }
 0x3a5   :  { %v328_v24 = vadd.f32 0.5, %v327_v23 }
 0x3a6   :  { %v260_v27 = vmul.f32 0.0, %v258_v20 }
 0x3a7   :  { %v330_v30 = vmul.f32 %v328_v24, %v2629_v39 }
 0x40d   :  { %v263_v21 = vpop.permute.xlu1 %262 }
 0x40e   :  { %v265_v22 = vmul.f32 %v263_v21, %v258_v20 }
 0x410   :  { %267 = vrot.lane.b32.xlu1 %v265_v22, %s2552_s7 }
 0x413   :  { %v333_v25 = vpop.permute.xlu0 %332 }
 0x414   :  { %v335_v26 = vmul.f32 %v333_v25, %v328_v24 }
 0x416   :  { %337 = vrot.lane.b32.xlu0 %v335_v26, %s2552_s7 }
 0x482   :  { %v268_v28 = vpop.permute.xlu1 %267 }
 0x483   :  { %v2704_v29 = vadd.f32 %v268_v28, %v260_v27 }
 0x485   :  { %2461 = vtanh.f32 %v2704_v29 }
 0x488   :  { %v338_v31 = vpop.permute.xlu0 %337 }
 0x489   :  { %v2708_v32 = vadd.f32 %v338_v31, %v330_v30 }
 0x48b   :  { %2463 = vtanh.f32 %v2708_v32 }
 0x492   :  { %v2462_v33 = vpop.eup %2461 }
 0x493   :  { %273 = vrot.lane.b32.xlu1 %v2462_v33, %s2551_s6 }
 0x498   :  { %v2464_v34 = vpop.eup %2463 }
 0x499   :  { %343 = vrot.lane.b32.xlu0 %v2464_v34, %s2551_s6 }
 0x505   :  { %v274_v35 = vpop.permute.xlu1 %273 }
 0x506   :  { %v2713_v36 = vmul.f32 %v274_v35, %v258_v20 }
 0x508   :  { %v395_v37 = vpack.c.bf16 %v2713_v36, %v2713_v36 }
 0x50a   :  { %397 = vrot.lane.b32.xlu1 %v395_v37, %s2552_s7 }
 0x50b   :  { %v344_v38 = vpop.permute.xlu0 %343 }
 0x50c   :  { %v346_v39 = vmul.f32 %v344_v38, %v328_v24 }
 0x50e   :  { %v347_v40 = vpack.c.bf16 %v346_v39, %v346_v39 }
 0x510   :  { %349 = vrot.lane.b32.xlu0 %v347_v40, %s2552_s7 }
 0x57c   :  { %v398_v41 = vpop.permute.xlu1 %397 }
 0x57d   :  { %2254 = vmatmul.mubr.msk.bf16.vlgmr.msra.gmra.mxu0 %vm29_vm1, %v398_v41 }
 0x57e   :  { %2266 = vmatpush3.bf16.msra.mxu0 %v2641_v43  ;;  %2269 = vmatprep.mubr.msk.bf16.mxu0 %vm2549_vm0, %v2548_v0 }
 0x57f   :  { %2267 = vmatprep.subr.bf16.mxu0 %v2548_v0 }
 0x582   :  { %v350_v42 = vpop.permute.xlu0 %349  ;;  %2268 = vmatpush3.bf16.msra.mxu0 %v2661_v50 }
 0x583   :  { %2246 = vmatmul.mubr.msk.bf16.vlgmr.msra.gmra.mxu1 %vm29_vm1, %v350_v42  ;;  %2281 = vmatprep.subr.bf16.mxu0 %v2548_v0 }
 0x584   :  { %2258 = vmatpush3.bf16.msra.mxu1 %v2597_v8  ;;  %2261 = vmatprep.mubr.msk.bf16.mxu1 %vm2549_vm0, %v2548_v0 }
 0x585   :  { %2259 = vmatprep.subr.bf16.mxu1 %v2548_v0 }
 0x588   :  { %2260 = vmatpush3.bf16.msra.mxu1 %v2613_v14 }
 0x589   :  { %2273 = vmatprep.subr.bf16.mxu1 %v2548_v0 }
 0x58b   :  { %2262 = vmatmul.mubr.msk.bf16.vlgmr.msra.gmra.mxu1 %vm29_vm1, %v350_v42 }
 0x58c   :  { %2274 = vmatpush3.bf16.msra.mxu1 %v2652_v47  ;;  %2277 = vmatprep.mubr.msk.bf16.mxu1 %vm2549_vm0, %v2548_v0 }
 0x58d   :  { %2275 = vmatprep.subr.bf16.mxu1 %v2548_v0 }
 0x590   :  { %2276 = vmatpush3.bf16.msra.mxu1 %v2665_v51 }
 0x591   :  { %2289 = vmatprep.subr.bf16.mxu1 %v2548_v0 }
 0x63d   :  { %v436_v44 = vpop.f32.mrf.mxu0 }
 0x63f   :  { %v2255_v45 = vpop.f32.mrf.mxu0 }
 0x640   :  { %v657_v45 = vld [vmem:[#allocation2 + $0x6] sm:$0x3] }
 0x641   :  { %v439_v46 = vpop.f32.mrf.mxu0 }
 0x643   :  { %v388_v48 = vpop.f32.mrf.mxu1  ;;  %v2256_v49 = vpop.f32.mrf.mxu0 }
 0x644   :  { %v394_v52 = vadd.f32 %v2697_v61, %v388_v48 }
 0x645   :  { %v2247_v53 = vpop.f32.mrf.mxu1 }
 0x646   :  { %v442_v54 = vadd.f32 %v436_v44, %v394_v52 }
 0x647   :  { %v391_v55 = vpop.f32.mrf.mxu1 }
 0x648   :  { %2465 = vtanh.f32 %v442_v54  ;;  %v443_v3 = vmul.f32 0.5, %v442_v54 }
 0x649   :  { %v2248_v56 = vpop.f32.mrf.mxu1 }
 0x64b   :  { %v505_v58 = vpop.f32.mrf.mxu1 }
 0x64c   :  { %v511_v59 = vadd.f32 %v505_v58, %v470_v57 }
 0x64d   :  { %v2263_v60 = vpop.f32.mrf.mxu1 }
 0x64e   :  { %2467 = vtanh.f32 %v511_v59  ;;  %v512_v4 = vmul.f32 0.5, %v511_v59 }
 0x64f   :  { %v508_v62 = vpop.f32.mrf.mxu1  ;;  %2469 = vtanh.f32 %v443_v3 }
 0x650   :  { %2471 = vtanh.f32 %v512_v4 }
 0x651   :  { %v2264_v63 = vpop.f32.mrf.mxu1 }
 0x655   :  { %v2466_v1 = vpop.eup %2465 }
 0x656   :  { %450 = vrot.lane.b32.xlu1 %v2466_v1, %s2551_s6 }
 0x65b   :  { %v2468_v2 = vpop.eup %2467 }
 0x65c   :  { %519 = vrot.lane.b32.xlu0 %v2468_v2, %s2551_s6  ;;  %v2470_v5 = vpop.eup %2469 }
 0x65d   :  { %v445_v6 = vmul.f32 0.5, %v2470_v5  ;;  %v2472_v7 = vpop.eup %2471 }
 0x65e   :  { %v514_v12 = vmul.f32 0.5, %v2472_v7 }
 0x65f   :  { %v446_v9 = vadd.f32 0.5, %v445_v6 }
 0x660   :  { %v515_v13 = vadd.f32 0.5, %v514_v12 }
 0x661   :  { %v448_v17 = vmul.f32 %v446_v9, %v2704_v29 }
 0x662   :  { %v517_v20 = vmul.f32 %v515_v13, %v2708_v32 }
 0x6c8   :  { %v451_v10 = vpop.permute.xlu1 %450 }
 0x6c9   :  { %v453_v11 = vmul.f32 %v451_v10, %v446_v9 }
 0x6cb   :  { %455 = vrot.lane.b32.xlu1 %v453_v11, %s2552_s7 }
 0x6ce   :  { %v520_v15 = vpop.permute.xlu0 %519 }
 0x6cf   :  { %v522_v16 = vmul.f32 %v520_v15, %v515_v13 }
 0x6d1   :  { %524 = vrot.lane.b32.xlu0 %v522_v16, %s2552_s7 }
 0x73d   :  { %v456_v18 = vpop.permute.xlu1 %455 }
 0x73e   :  { %v2746_v19 = vadd.f32 %v456_v18, %v448_v17 }
 0x740   :  { %2473 = vtanh.f32 %v2746_v19 }
 0x743   :  { %v525_v21 = vpop.permute.xlu0 %524 }
 0x744   :  { %v2750_v22 = vadd.f32 %v525_v21, %v517_v20 }
 0x746   :  { %2475 = vtanh.f32 %v2750_v22 }
 0x74d   :  { %v2474_v23 = vpop.eup %2473 }
 0x74e   :  { %461 = vrot.lane.b32.xlu1 %v2474_v23, %s2551_s6 }
 0x753   :  { %v2476_v24 = vpop.eup %2475 }
 0x754   :  { %530 = vrot.lane.b32.xlu0 %v2476_v24, %s2551_s6 }
 0x7c0   :  { %v462_v25 = vpop.permute.xlu1 %461 }
 0x7c1   :  { %v2755_v26 = vmul.f32 %v462_v25, %v446_v9 }
 0x7c3   :  { %v582_v27 = vpack.c.bf16 %v2755_v26, %v2755_v26 }
 0x7c5   :  { %584 = vrot.lane.b32.xlu1 %v582_v27, %s2552_s7 }
 0x7c6   :  { %v531_v28 = vpop.permute.xlu0 %530 }
 0x7c7   :  { %v533_v29 = vmul.f32 %v531_v28, %v515_v13 }
 0x7c9   :  { %v534_v30 = vpack.c.bf16 %v533_v29, %v533_v29 }
 0x7cb   :  { %536 = vrot.lane.b32.xlu0 %v534_v30, %s2552_s7 }
 0x837   :  { %v585_v31 = vpop.permute.xlu1 %584 }
 0x838   :  { %2278 = vmatmul.mubr.msk.bf16.vlgmr.msra.gmra.mxu1 %vm29_vm1, %v585_v31 }
 0x839   :  { %2290 = vmatpush3.bf16.msra.mxu1 %v2641_v43  ;;  %2293 = vmatprep.mubr.msk.bf16.mxu1 %vm2549_vm0, %v2548_v0 }
 0x83a   :  { %2291 = vmatprep.subr.bf16.mxu1 %v2548_v0 }
 0x83d   :  { %v537_v32 = vpop.permute.xlu0 %536  ;;  %2292 = vmatpush3.bf16.msra.mxu1 %v2661_v50 }
 0x83e   :  { %2270 = vmatmul.mubr.msk.bf16.vlgmr.msra.gmra.mxu0 %vm29_vm1, %v537_v32  ;;  %2305 = vmatprep.subr.bf16.mxu1 %v2548_v0 }
 0x83f   :  { %2282 = vmatpush3.bf16.msra.mxu0 %v2597_v8  ;;  %2285 = vmatprep.mubr.msk.bf16.mxu0 %vm2549_vm0, %v2548_v0 }
 0x840   :  { %2283 = vmatprep.subr.bf16.mxu0 %v2548_v0 }
 0x843   :  { %2284 = vmatpush3.bf16.msra.mxu0 %v2613_v14 }
 0x844   :  { %2297 = vmatprep.subr.bf16.mxu0 %v2548_v0 }
 0x846   :  { %2286 = vmatmul.mubr.msk.bf16.vlgmr.msra.gmra.mxu0 %vm29_vm1, %v537_v32 }
 0x847   :  { %2298 = vmatpush3.bf16.msra.mxu0 %v2652_v47  ;;  %2301 = vmatprep.mubr.msk.bf16.mxu0 %vm2549_vm0, %v2548_v0 }
 0x848   :  { %2299 = vmatprep.subr.bf16.mxu0 %v2548_v0 }
 0x84b   :  { %2300 = vmatpush3.bf16.msra.mxu0 %v2665_v51 }
 0x84c   :  { %2313 = vmatprep.subr.bf16.mxu0 %v2548_v0 }
 0x8f8   :  { %v623_v33 = vpop.f32.mrf.mxu1 }
 0x8fa   :  { %v2279_v34 = vpop.f32.mrf.mxu1 }
 0x8fc   :  { %v626_v35 = vpop.f32.mrf.mxu1 }
 0x8fd   :  { %v844_v35 = vld [vmem:[#allocation2 + $0x8] sm:$0x3] }
 0x8fe   :  { %v575_v37 = vpop.f32.mrf.mxu0  ;;  %v2280_v38 = vpop.f32.mrf.mxu1 }
 0x8ff   :  { %v581_v39 = vadd.f32 %v2697_v61, %v575_v37 }
 0x900   :  { %v2271_v40 = vpop.f32.mrf.mxu0 }
 0x901   :  { %v629_v41 = vadd.f32 %v623_v33, %v581_v39 }
 0x902   :  { %v578_v42 = vpop.f32.mrf.mxu0 }
 0x903   :  { %2477 = vtanh.f32 %v629_v41  ;;  %v630_v56 = vmul.f32 0.5, %v629_v41 }
 0x904   :  { %v2272_v44 = vpop.f32.mrf.mxu0 }
 0x906   :  { %v692_v46 = vpop.f32.mrf.mxu0 }
 0x907   :  { %v698_v48 = vadd.f32 %v692_v46, %v657_v45 }
 0x908   :  { %v2287_v49 = vpop.f32.mrf.mxu0 }
 0x909   :  { %2479 = vtanh.f32 %v698_v48  ;;  %v699_v57 = vmul.f32 0.5, %v698_v48 }
 0x90a   :  { %v695_v52 = vpop.f32.mrf.mxu0  ;;  %2481 = vtanh.f32 %v630_v56 }
 0x90b   :  { %2483 = vtanh.f32 %v699_v57 }
 0x90c   :  { %v2288_v53 = vpop.f32.mrf.mxu0 }
 0x910   :  { %v2478_v54 = vpop.eup %2477 }
 0x911   :  { %637 = vrot.lane.b32.xlu1 %v2478_v54, %s2551_s6 }
 0x916   :  { %v2480_v55 = vpop.eup %2479 }
 0x917   :  { %706 = vrot.lane.b32.xlu0 %v2480_v55, %s2551_s6  ;;  %v2482_v58 = vpop.eup %2481 }
 0x918   :  { %v632_v59 = vmul.f32 0.5, %v2482_v58  ;;  %v2484_v60 = vpop.eup %2483 }
 0x919   :  { %v701_v2 = vmul.f32 0.5, %v2484_v60 }
 0x91a   :  { %v633_v62 = vadd.f32 0.5, %v632_v59 }
 0x91b   :  { %v702_v3 = vadd.f32 0.5, %v701_v2 }
 0x91c   :  { %v635_v6 = vmul.f32 %v633_v62, %v2746_v19 }
 0x91d   :  { %v704_v10 = vmul.f32 %v702_v3, %v2750_v22 }
 0x983   :  { %v638_v63 = vpop.permute.xlu1 %637 }
 0x984   :  { %v640_v1 = vmul.f32 %v638_v63, %v633_v62 }
 0x986   :  { %642 = vrot.lane.b32.xlu1 %v640_v1, %s2552_s7 }
 0x989   :  { %v707_v4 = vpop.permute.xlu0 %706 }
 0x98a   :  { %v709_v5 = vmul.f32 %v707_v4, %v702_v3 }
 0x98c   :  { %711 = vrot.lane.b32.xlu0 %v709_v5, %s2552_s7 }
 0x9f8   :  { %v643_v7 = vpop.permute.xlu1 %642 }
 0x9f9   :  { %v2788_v9 = vadd.f32 %v643_v7, %v635_v6 }
 0x9fb   :  { %2485 = vtanh.f32 %v2788_v9 }
 0x9fe   :  { %v712_v11 = vpop.permute.xlu0 %711 }
 0x9ff   :  { %v2792_v12 = vadd.f32 %v712_v11, %v704_v10 }
 0xa01   :  { %2487 = vtanh.f32 %v2792_v12 }
 0xa08   :  { %v2486_v13 = vpop.eup %2485 }
 0xa09   :  { %648 = vrot.lane.b32.xlu1 %v2486_v13, %s2551_s6 }
 0xa0e   :  { %v2488_v15 = vpop.eup %2487 }
 0xa0f   :  { %717 = vrot.lane.b32.xlu0 %v2488_v15, %s2551_s6 }
 0xa7b   :  { %v649_v16 = vpop.permute.xlu1 %648 }
 0xa7c   :  { %v2797_v17 = vmul.f32 %v649_v16, %v633_v62 }
 0xa7e   :  { %v769_v18 = vpack.c.bf16 %v2797_v17, %v2797_v17 }
 0xa80   :  { %771 = vrot.lane.b32.xlu1 %v769_v18, %s2552_s7 }
 0xa81   :  { %v718_v19 = vpop.permute.xlu0 %717 }
 0xa82   :  { %v720_v20 = vmul.f32 %v718_v19, %v702_v3 }
 0xa84   :  { %v721_v21 = vpack.c.bf16 %v720_v20, %v720_v20 }
 0xa86   :  { %723 = vrot.lane.b32.xlu0 %v721_v21, %s2552_s7 }
 0xaf2   :  { %v772_v22 = vpop.permute.xlu1 %771 }
 0xaf3   :  { %2302 = vmatmul.mubr.msk.bf16.vlgmr.msra.gmra.mxu0 %vm29_vm1, %v772_v22 }
 0xaf4   :  { %2314 = vmatpush3.bf16.msra.mxu0 %v2641_v43  ;;  %2317 = vmatprep.mubr.msk.bf16.mxu0 %vm2549_vm0, %v2548_v0 }
 0xaf5   :  { %2315 = vmatprep.subr.bf16.mxu0 %v2548_v0 }
 0xaf8   :  { %v724_v23 = vpop.permute.xlu0 %723  ;;  %2316 = vmatpush3.bf16.msra.mxu0 %v2661_v50 }
 0xaf9   :  { %2294 = vmatmul.mubr.msk.bf16.vlgmr.msra.gmra.mxu1 %vm29_vm1, %v724_v23  ;;  %2329 = vmatprep.subr.bf16.mxu0 %v2548_v0 }
 0xafa   :  { %2306 = vmatpush3.bf16.msra.mxu1 %v2597_v8  ;;  %2309 = vmatprep.mubr.msk.bf16.mxu1 %vm2549_vm0, %v2548_v0 }
 0xafb   :  { %2307 = vmatprep.subr.bf16.mxu1 %v2548_v0 }
 0xafe   :  { %2308 = vmatpush3.bf16.msra.mxu1 %v2613_v14 }
 0xaff   :  { %2321 = vmatprep.subr.bf16.mxu1 %v2548_v0 }
 0xb01   :  { %2310 = vmatmul.mubr.msk.bf16.vlgmr.msra.gmra.mxu1 %vm29_vm1, %v724_v23 }
 0xb02   :  { %2322 = vmatpush3.bf16.msra.mxu1 %v2652_v47  ;;  %2325 = vmatprep.mubr.msk.bf16.mxu1 %vm2549_vm0, %v2548_v0 }
 0xb03   :  { %2323 = vmatprep.subr.bf16.mxu1 %v2548_v0 }
 0xb06   :  { %2324 = vmatpush3.bf16.msra.mxu1 %v2665_v51 }
 0xb07   :  { %2337 = vmatprep.subr.bf16.mxu1 %v2548_v0 }
 0xbb3   :  { %v810_v24 = vpop.f32.mrf.mxu0 }
 0xbb5   :  { %v2303_v25 = vpop.f32.mrf.mxu0 }
 0xbb7   :  { %v813_v27 = vpop.f32.mrf.mxu0 }
 0xbb9   :  { %v762_v28 = vpop.f32.mrf.mxu1  ;;  %v2304_v29 = vpop.f32.mrf.mxu0 }
 0xbba   :  { %v768_v30 = vadd.f32 %v2697_v61, %v762_v28  ;;  %v1031_v28 = vld [vmem:[#allocation2 + $0xa] sm:$0x3] }
 0xbbb   :  { %v2295_v31 = vpop.f32.mrf.mxu1 }
 0xbbc   :  { %v816_v32 = vadd.f32 %v810_v24, %v768_v30 }
 0xbbd   :  { %v765_v33 = vpop.f32.mrf.mxu1 }
 0xbbe   :  { %2489 = vtanh.f32 %v816_v32  ;;  %v817_v45 = vmul.f32 0.5, %v816_v32 }
 0xbbf   :  { %v2296_v34 = vpop.f32.mrf.mxu1 }
 0xbc1   :  { %v879_v37 = vpop.f32.mrf.mxu1 }
 0xbc2   :  { %v885_v38 = vadd.f32 %v879_v37, %v844_v35 }
 0xbc3   :  { %v2311_v39 = vpop.f32.mrf.mxu1 }
 0xbc4   :  { %2491 = vtanh.f32 %v885_v38  ;;  %v886_v46 = vmul.f32 0.5, %v885_v38 }
 0xbc5   :  { %v882_v40 = vpop.f32.mrf.mxu1  ;;  %2493 = vtanh.f32 %v817_v45 }
 0xbc6   :  { %2495 = vtanh.f32 %v886_v46 }
 0xbc7   :  { %v2312_v41 = vpop.f32.mrf.mxu1 }
 0xbcb   :  { %v2490_v42 = vpop.eup %2489 }
 0xbcc   :  { %824 = vrot.lane.b32.xlu1 %v2490_v42, %s2551_s6 }
 0xbd1   :  { %v2492_v44 = vpop.eup %2491 }
 0xbd2   :  { %893 = vrot.lane.b32.xlu0 %v2492_v44, %s2551_s6  ;;  %v2494_v48 = vpop.eup %2493 }
 0xbd3   :  { %v819_v49 = vmul.f32 0.5, %v2494_v48  ;;  %v2496_v52 = vpop.eup %2495 }
 0xbd4   :  { %v888_v56 = vmul.f32 0.5, %v2496_v52 }
 0xbd5   :  { %v820_v53 = vadd.f32 0.5, %v819_v49 }
 0xbd6   :  { %v889_v57 = vadd.f32 0.5, %v888_v56 }
 0xbd7   :  { %v822_v60 = vmul.f32 %v820_v53, %v2788_v9 }
 0xbd8   :  { %v891_v1 = vmul.f32 %v889_v57, %v2792_v12 }
 0xc3e   :  { %v825_v54 = vpop.permute.xlu1 %824 }
 0xc3f   :  { %v827_v55 = vmul.f32 %v825_v54, %v820_v53 }
 0xc41   :  { %829 = vrot.lane.b32.xlu1 %v827_v55, %s2552_s7 }
 0xc44   :  { %v894_v58 = vpop.permute.xlu0 %893 }
 0xc45   :  { %v896_v59 = vmul.f32 %v894_v58, %v889_v57 }
 0xc47   :  { %898 = vrot.lane.b32.xlu0 %v896_v59, %s2552_s7 }
 0xcb3   :  { %v830_v62 = vpop.permute.xlu1 %829 }
 0xcb4   :  { %v2830_v63 = vadd.f32 %v830_v62, %v822_v60 }
 0xcb6   :  { %2497 = vtanh.f32 %v2830_v63 }
 0xcb9   :  { %v899_v2 = vpop.permute.xlu0 %898 }
 0xcba   :  { %v2834_v3 = vadd.f32 %v899_v2, %v891_v1 }
 0xcbc   :  { %2499 = vtanh.f32 %v2834_v3 }
 0xcc3   :  { %v2498_v4 = vpop.eup %2497 }
 0xcc4   :  { %835 = vrot.lane.b32.xlu1 %v2498_v4, %s2551_s6 }
 0xcc9   :  { %v2500_v5 = vpop.eup %2499 }
 0xcca   :  { %904 = vrot.lane.b32.xlu0 %v2500_v5, %s2551_s6 }
 0xd36   :  { %v836_v6 = vpop.permute.xlu1 %835 }
 0xd37   :  { %v2839_v7 = vmul.f32 %v836_v6, %v820_v53 }
 0xd39   :  { %v956_v9 = vpack.c.bf16 %v2839_v7, %v2839_v7 }
 0xd3b   :  { %958 = vrot.lane.b32.xlu1 %v956_v9, %s2552_s7 }
 0xd3c   :  { %v905_v10 = vpop.permute.xlu0 %904 }
 0xd3d   :  { %v907_v11 = vmul.f32 %v905_v10, %v889_v57 }
 0xd3f   :  { %v908_v12 = vpack.c.bf16 %v907_v11, %v907_v11 }
 0xd41   :  { %910 = vrot.lane.b32.xlu0 %v908_v12, %s2552_s7 }
 0xdad   :  { %v959_v13 = vpop.permute.xlu1 %958 }
 0xdae   :  { %2326 = vmatmul.mubr.msk.bf16.vlgmr.msra.gmra.mxu1 %vm29_vm1, %v959_v13 }
 0xdaf   :  { %2338 = vmatpush3.bf16.msra.mxu1 %v2641_v43  ;;  %2341 = vmatprep.mubr.msk.bf16.mxu1 %vm2549_vm0, %v2548_v0 }
 0xdb0   :  { %2339 = vmatprep.subr.bf16.mxu1 %v2548_v0 }
 0xdb3   :  { %v911_v15 = vpop.permute.xlu0 %910  ;;  %2340 = vmatpush3.bf16.msra.mxu1 %v2661_v50 }
 0xdb4   :  { %2318 = vmatmul.mubr.msk.bf16.vlgmr.msra.gmra.mxu0 %vm29_vm1, %v911_v15  ;;  %2353 = vmatprep.subr.bf16.mxu1 %v2548_v0 }
 0xdb5   :  { %2330 = vmatpush3.bf16.msra.mxu0 %v2597_v8  ;;  %2333 = vmatprep.mubr.msk.bf16.mxu0 %vm2549_vm0, %v2548_v0 }
 0xdb6   :  { %2331 = vmatprep.subr.bf16.mxu0 %v2548_v0 }
 0xdb9   :  { %2332 = vmatpush3.bf16.msra.mxu0 %v2613_v14 }
 0xdba   :  { %2345 = vmatprep.subr.bf16.mxu0 %v2548_v0 }
 0xdbc   :  { %2334 = vmatmul.mubr.msk.bf16.vlgmr.msra.gmra.mxu0 %vm29_vm1, %v911_v15 }
 0xdbd   :  { %2346 = vmatpush3.bf16.msra.mxu0 %v2652_v47  ;;  %2349 = vmatprep.mubr.msk.bf16.mxu0 %vm2549_vm0, %v2548_v0 }
 0xdbe   :  { %2347 = vmatprep.subr.bf16.mxu0 %v2548_v0 }
 0xdc1   :  { %2348 = vmatpush3.bf16.msra.mxu0 %v2665_v51 }
 0xdc2   :  { %2361 = vmatprep.subr.bf16.mxu0 %v2548_v0 }
 0xe6e   :  { %v997_v16 = vpop.f32.mrf.mxu1 }
 0xe70   :  { %v2327_v18 = vpop.f32.mrf.mxu1 }
 0xe72   :  { %v1000_v19 = vpop.f32.mrf.mxu1 }
 0xe74   :  { %v949_v20 = vpop.f32.mrf.mxu0  ;;  %v2328_v21 = vpop.f32.mrf.mxu1 }
 0xe75   :  { %v955_v22 = vadd.f32 %v2697_v61, %v949_v20  ;;  %v1218_v21 = vld [vmem:[#allocation2 + $0xc] sm:$0x3] }
 0xe76   :  { %v2319_v23 = vpop.f32.mrf.mxu0 }
 0xe77   :  { %v1003_v24 = vadd.f32 %v997_v16, %v955_v22 }
 0xe78   :  { %v952_v25 = vpop.f32.mrf.mxu0 }
 0xe79   :  { %2501 = vtanh.f32 %v1003_v24  ;;  %v1004_v37 = vmul.f32 0.5, %v1003_v24 }
 0xe7a   :  { %v2320_v27 = vpop.f32.mrf.mxu0 }
 0xe7c   :  { %v1066_v29 = vpop.f32.mrf.mxu0 }
 0xe7d   :  { %v1072_v30 = vadd.f32 %v1066_v29, %v1031_v28 }
 0xe7e   :  { %v2335_v31 = vpop.f32.mrf.mxu0 }
 0xe7f   :  { %2503 = vtanh.f32 %v1072_v30  ;;  %v1073_v38 = vmul.f32 0.5, %v1072_v30 }
 0xe80   :  { %v1069_v32 = vpop.f32.mrf.mxu0  ;;  %2505 = vtanh.f32 %v1004_v37 }
 0xe81   :  { %2507 = vtanh.f32 %v1073_v38 }
 0xe82   :  { %v2336_v33 = vpop.f32.mrf.mxu0 }
 0xe86   :  { %v2502_v34 = vpop.eup %2501 }
 0xe87   :  { %1011 = vrot.lane.b32.xlu1 %v2502_v34, %s2551_s6 }
 0xe8c   :  { %v2504_v35 = vpop.eup %2503 }
 0xe8d   :  { %1080 = vrot.lane.b32.xlu0 %v2504_v35, %s2551_s6  ;;  %v2506_v39 = vpop.eup %2505 }
 0xe8e   :  { %v1006_v40 = vmul.f32 0.5, %v2506_v39  ;;  %v2508_v41 = vpop.eup %2507 }
 0xe8f   :  { %v1075_v46 = vmul.f32 0.5, %v2508_v41 }
 0xe90   :  { %v1007_v42 = vadd.f32 0.5, %v1006_v40 }
 0xe91   :  { %v1076_v48 = vadd.f32 0.5, %v1075_v46 }
 0xe92   :  { %v1009_v53 = vmul.f32 %v1007_v42, %v2830_v63 }
 0xe93   :  { %v1078_v56 = vmul.f32 %v1076_v48, %v2834_v3 }
 0xef9   :  { %v1012_v44 = vpop.permute.xlu1 %1011 }
 0xefa   :  { %v1014_v45 = vmul.f32 %v1012_v44, %v1007_v42 }
 0xefc   :  { %1016 = vrot.lane.b32.xlu1 %v1014_v45, %s2552_s7 }
 0xeff   :  { %v1081_v49 = vpop.permute.xlu0 %1080 }
 0xf00   :  { %v1083_v52 = vmul.f32 %v1081_v49, %v1076_v48 }
 0xf02   :  { %1085 = vrot.lane.b32.xlu0 %v1083_v52, %s2552_s7 }
 0xf6e   :  { %v1017_v54 = vpop.permute.xlu1 %1016 }
 0xf6f   :  { %v2872_v55 = vadd.f32 %v1017_v54, %v1009_v53 }
 0xf71   :  { %2509 = vtanh.f32 %v2872_v55 }
 0xf74   :  { %v1086_v57 = vpop.permute.xlu0 %1085 }
 0xf75   :  { %v2876_v58 = vadd.f32 %v1086_v57, %v1078_v56 }
 0xf77   :  { %2511 = vtanh.f32 %v2876_v58 }
 0xf7e   :  { %v2510_v59 = vpop.eup %2509 }
 0xf7f   :  { %1022 = vrot.lane.b32.xlu1 %v2510_v59, %s2551_s6 }
 0xf84   :  { %v2512_v60 = vpop.eup %2511 }
 0xf85   :  { %1091 = vrot.lane.b32.xlu0 %v2512_v60, %s2551_s6 }
 0xff1   :  { %v1023_v62 = vpop.permute.xlu1 %1022 }
 0xff2   :  { %v2881_v63 = vmul.f32 %v1023_v62, %v1007_v42 }
 0xff4   :  { %v1143_v1 = vpack.c.bf16 %v2881_v63, %v2881_v63 }
 0xff6   :  { %1145 = vrot.lane.b32.xlu1 %v1143_v1, %s2552_s7 }
 0xff7   :  { %v1092_v2 = vpop.permute.xlu0 %1091 }
 0xff8   :  { %v1094_v3 = vmul.f32 %v1092_v2, %v1076_v48 }
 0xffa   :  { %v1095_v4 = vpack.c.bf16 %v1094_v3, %v1094_v3 }
 0xffc   :  { %1097 = vrot.lane.b32.xlu0 %v1095_v4, %s2552_s7 }
0x1068   :  { %v1146_v5 = vpop.permute.xlu1 %1145 }
0x1069   :  { %2350 = vmatmul.mubr.msk.bf16.vlgmr.msra.gmra.mxu0 %vm29_vm1, %v1146_v5 }
0x106a   :  { %2362 = vmatpush3.bf16.msra.mxu0 %v2641_v43  ;;  %2365 = vmatprep.mubr.msk.bf16.mxu0 %vm2549_vm0, %v2548_v0 }
0x106b   :  { %2363 = vmatprep.subr.bf16.mxu0 %v2548_v0 }
0x106e   :  { %v1098_v6 = vpop.permute.xlu0 %1097  ;;  %2364 = vmatpush3.bf16.msra.mxu0 %v2661_v50 }
0x106f   :  { %2342 = vmatmul.mubr.msk.bf16.vlgmr.msra.gmra.mxu1 %vm29_vm1, %v1098_v6  ;;  %2377 = vmatprep.subr.bf16.mxu0 %v2548_v0 }
0x1070   :  { %2354 = vmatpush3.bf16.msra.mxu1 %v2597_v8  ;;  %2357 = vmatprep.mubr.msk.bf16.mxu1 %vm2549_vm0, %v2548_v0 }
0x1071   :  { %2355 = vmatprep.subr.bf16.mxu1 %v2548_v0 }
0x1074   :  { %2356 = vmatpush3.bf16.msra.mxu1 %v2613_v14 }
0x1075   :  { %2369 = vmatprep.subr.bf16.mxu1 %v2548_v0 }
0x1077   :  { %2358 = vmatmul.mubr.msk.bf16.vlgmr.msra.gmra.mxu1 %vm29_vm1, %v1098_v6 }
0x1078   :  { %2370 = vmatpush3.bf16.msra.mxu1 %v2652_v47  ;;  %2373 = vmatprep.mubr.msk.bf16.mxu1 %vm2549_vm0, %v2548_v0 }
0x1079   :  { %2371 = vmatprep.subr.bf16.mxu1 %v2548_v0 }
0x107c   :  { %2372 = vmatpush3.bf16.msra.mxu1 %v2665_v51 }
0x107d   :  { %2385 = vmatprep.subr.bf16.mxu1 %v2548_v0 }
0x1129   :  { %v1184_v9 = vpop.f32.mrf.mxu0 }
0x112b   :  { %v2351_v10 = vpop.f32.mrf.mxu0 }
0x112d   :  { %v1187_v11 = vpop.f32.mrf.mxu0 }
0x112f   :  { %v1136_v12 = vpop.f32.mrf.mxu1  ;;  %v2352_v13 = vpop.f32.mrf.mxu0 }
0x1130   :  { %v1142_v15 = vadd.f32 %v2697_v61, %v1136_v12 }
0x1131   :  { %v2343_v16 = vpop.f32.mrf.mxu1 }
0x1132   :  { %v1190_v18 = vadd.f32 %v1184_v9, %v1142_v15 }
0x1133   :  { %v1139_v19 = vpop.f32.mrf.mxu1 }
0x1134   :  { %2513 = vtanh.f32 %v1190_v18  ;;  %v1191_v30 = vmul.f32 0.5, %v1190_v18 }
0x1135   :  { %v2344_v20 = vpop.f32.mrf.mxu1 }
0x1137   :  { %v1253_v22 = vpop.f32.mrf.mxu1 }
0x1138   :  { %v1259_v23 = vadd.f32 %v1253_v22, %v1218_v21 }
0x1139   :  { %v2359_v24 = vpop.f32.mrf.mxu1 }
0x113a   :  { %2515 = vtanh.f32 %v1259_v23  ;;  %v1260_v31 = vmul.f32 0.5, %v1259_v23 }
0x113b   :  { %v1256_v25 = vpop.f32.mrf.mxu1  ;;  %2517 = vtanh.f32 %v1191_v30 }
0x113c   :  { %2519 = vtanh.f32 %v1260_v31 }
0x113d   :  { %v2360_v27 = vpop.f32.mrf.mxu1 }
0x1141   :  { %v2514_v28 = vpop.eup %2513 }
0x1142   :  { %1198 = vrot.lane.b32.xlu1 %v2514_v28, %s2551_s6 }
0x1147   :  { %v2516_v29 = vpop.eup %2515 }
0x1148   :  { %1267 = vrot.lane.b32.xlu0 %v2516_v29, %s2551_s6  ;;  %v2518_v32 = vpop.eup %2517 }
0x1149   :  { %v1193_v33 = vmul.f32 0.5, %v2518_v32  ;;  %v2520_v34 = vpop.eup %2519 }
0x114a   :  { %v1262_v39 = vmul.f32 0.5, %v2520_v34 }
0x114b   :  { %v1194_v35 = vadd.f32 0.5, %v1193_v33 }
0x114c   :  { %v1263_v40 = vadd.f32 0.5, %v1262_v39 }
0x114d   :  { %v1196_v44 = vmul.f32 %v1194_v35, %v2872_v55 }
0x114e   :  { %v1265_v48 = vmul.f32 %v1263_v40, %v2876_v58 }
0x11b4   :  { %v1199_v37 = vpop.permute.xlu1 %1198 }
0x11b5   :  { %v1201_v38 = vmul.f32 %v1199_v37, %v1194_v35 }
0x11b7   :  { %1203 = vrot.lane.b32.xlu1 %v1201_v38, %s2552_s7 }
0x11ba   :  { %v1268_v41 = vpop.permute.xlu0 %1267 }
0x11bb   :  { %v1270_v42 = vmul.f32 %v1268_v41, %v1263_v40 }
0x11bd   :  { %1272 = vrot.lane.b32.xlu0 %v1270_v42, %s2552_s7 }
0x1229   :  { %v1204_v45 = vpop.permute.xlu1 %1203 }
0x122a   :  { %v2914_v46 = vadd.f32 %v1204_v45, %v1196_v44 }
0x122c   :  { %2521 = vtanh.f32 %v2914_v46 }
0x122f   :  { %v1273_v49 = vpop.permute.xlu0 %1272 }
0x1230   :  { %v2918_v52 = vadd.f32 %v1273_v49, %v1265_v48 }
0x1232   :  { %2523 = vtanh.f32 %v2918_v52 }
0x1239   :  { %v2522_v53 = vpop.eup %2521 }
0x123a   :  { %1209 = vrot.lane.b32.xlu1 %v2522_v53, %s2551_s6 }
0x123f   :  { %v2524_v54 = vpop.eup %2523 }
0x1240   :  { %1278 = vrot.lane.b32.xlu0 %v2524_v54, %s2551_s6 }
0x12ac   :  { %v1210_v56 = vpop.permute.xlu1 %1209 }
0x12ad   :  { %v2923_v55 = vmul.f32 %v1210_v56, %v1194_v35  ;;  %v2547_v56 = vld [vmem:[%s3065_s2 + $0x88] ss:$0 sm:$0xff] }
0x12af   :  { %v1330_v57 = vpack.c.bf16 %v2923_v55, %v2923_v55 }
0x12b1   :  { %1332 = vrot.lane.b32.xlu1 %v1330_v57, %s2552_s7 }
0x12b2   :  { %v1279_v58 = vpop.permute.xlu0 %1278 }
0x12b3   :  { %v1281_v59 = vmul.f32 %v1279_v58, %v1263_v40 }
0x12b5   :  { %v1282_v60 = vpack.c.bf16 %v1281_v59, %v1281_v59 }
0x12b7   :  { %1284 = vrot.lane.b32.xlu0 %v1282_v60, %s2552_s7 }
0x1323   :  { %v1333_v62 = vpop.permute.xlu1 %1332 }
0x1324   :  { %2374 = vmatmul.mubr.msk.bf16.vlgmr.msra.gmra.mxu1 %vm29_vm1, %v1333_v62 }
0x1325   :  { %2386 = vmatpush3.bf16.msra.mxu1 %v2641_v43  ;;  %2389 = vmatprep.mubr.msk.bf16.mxu1 %vm2549_vm0, %v2548_v0 }
0x1326   :  { %2387 = vmatprep.subr.bf16.mxu1 %v2548_v0 }
0x1329   :  { %v1285_v1 = vpop.permute.xlu0 %1284  ;;  %2388 = vmatpush3.bf16.msra.mxu1 %v2661_v50 }
0x132a   :  { %2366 = vmatmul.mubr.msk.bf16.vlgmr.msra.gmra.mxu0 %vm29_vm1, %v1285_v1 }
0x132b   :  { %2378 = vmatpush3.bf16.msra.mxu0 %v2597_v8  ;;  %2381 = vmatprep.mubr.msk.bf16.mxu0 %vm2549_vm0, %v2548_v0 }
0x132c   :  { %2379 = vmatprep.subr.bf16.mxu0 %v2548_v0 }
0x132f   :  { %2380 = vmatpush3.bf16.msra.mxu0 %v2613_v14 }
0x1330   :  { %2393 = vmatprep.subr.bf16.mxu0 %v2548_v0 }
0x1332   :  { %2382 = vmatmul.mubr.msk.bf16.vlgmr.msra.gmra.mxu0 %vm29_vm1, %v1285_v1 }
0x1333   :  { %2394 = vmatpush3.bf16.msra.mxu0 %v2652_v47  ;;  %2397 = vmatprep.mubr.msk.bf16.mxu0 %vm2549_vm0, %v2548_v0  ;;  %v1405_v47 = vld [vmem:[#allocation2 + $0xe] sm:$0x3] }
0x1334   :  { %2395 = vmatprep.subr.bf16.mxu0 %v2548_v0 }
0x1337   :  { %2396 = vmatpush3.bf16.msra.mxu0 %v2665_v51 }
0x13e4   :  { %v1371_v8 = vpop.f32.mrf.mxu1 }
0x13e6   :  { %v2375_v43 = vpop.f32.mrf.mxu1 }
0x13e8   :  { %v1374_v50 = vpop.f32.mrf.mxu1 }
0x13ea   :  { %v1323_v2 = vpop.f32.mrf.mxu0  ;;  %v2376_v3 = vpop.f32.mrf.mxu1 }
0x13eb   :  { %v1329_v14 = vadd.f32 %v2697_v61, %v1323_v2 }
0x13ec   :  { %v2367_v4 = vpop.f32.mrf.mxu0 }
0x13ed   :  { %v1377_v5 = vadd.f32 %v1371_v8, %v1329_v14  ;;  %v1597_v4 = vld [vmem:[%s3065_s2 + $0x98] sm:$0xff] }
0x13ee   :  { %v1326_v6 = vpop.f32.mrf.mxu0  ;;  %2401 = vmatprep.subr.mxu1 %v1597_v4 }
0x13ef   :  { %2525 = vtanh.f32 %v1377_v5  ;;  %v1378_v16 = vmul.f32 0.5, %v1377_v5  ;;  %v1596_v5 = vld [vmem:[%s3065_s2 + $0x90] sm:$0xff] }
0x13f0   :  { %v2368_v9 = vpop.f32.mrf.mxu0 }
0x13f2   :  { %v1440_v10 = vpop.f32.mrf.mxu0 }
0x13f3   :  { %v1446_v11 = vadd.f32 %v1440_v10, %v1405_v47 }
0x13f4   :  { %v2383_v12 = vpop.f32.mrf.mxu0 }
0x13f5   :  { %2527 = vtanh.f32 %v1446_v11  ;;  %v1447_v61 = vmul.f32 0.5, %v1446_v11 }
0x13f6   :  { %v1443_v0 = vpop.f32.mrf.mxu0  ;;  %2529 = vtanh.f32 %v1378_v16 }
0x13f7   :  { %2531 = vtanh.f32 %v1447_v61 }
0x13f8   :  { %v2384_v13 = vpop.f32.mrf.mxu0 }
0x13f9   :  { %v1694_v13 = vld [vmem:[%s3065_s2 + $0xe0] sm:$0xff] }
0x13fa   :  { %2408 = vmatprep.subr.mxu0 %v1694_v13 }
0x13fc   :  { %v2526_v51 = vpop.eup %2525 }
0x13fd   :  { %1385 = vrot.lane.b32.xlu1 %v2526_v51, %s2551_s6  ;;  %v1693_v51 = vld [vmem:[%s3065_s2 + $0xd8] sm:$0xff] }
0x1402   :  { %v2528_v15 = vpop.eup %2527 }
0x1403   :  { %1454 = vrot.lane.b32.xlu0 %v2528_v15, %s2551_s6  ;;  %v2530_v18 = vpop.eup %2529  ;;  %v1692_v15 = vld [vmem:[%s3065_s2 + $0xd0] sm:$0xff] }
0x1404   :  { %v1380_v19 = vmul.f32 0.5, %v2530_v18  ;;  %v2532_v20 = vpop.eup %2531 }
0x1405   :  { %v1449_v24 = vmul.f32 0.5, %v2532_v20 }
0x1406   :  { %v1381_v21 = vadd.f32 0.5, %v1380_v19 }
0x1407   :  { %v1450_v25 = vadd.f32 0.5, %v1449_v24  ;;  %v1687_v24 = vld [vmem:[%s3065_s2 + $0xa8] sm:$0xff] }
0x1408   :  { %v1383_v29 = vmul.f32 %v1381_v21, %v2914_v46 }
0x1409   :  { %v1452_v32 = vmul.f32 %v1450_v25, %v2918_v52 }
0x146f   :  { %v1386_v22 = vpop.permute.xlu1 %1385 }
0x1470   :  { %v1388_v23 = vmul.f32 %v1386_v22, %v1381_v21  ;;  %v1689_v22 = vld [vmem:[%s3065_s2 + $0xb8] sm:$0xff] }
0x1472   :  { %1390 = vrot.lane.b32.xlu1 %v1388_v23, %s2552_s7  ;;  %v1688_v23 = vld [vmem:[%s3065_s2 + $0xb0] sm:$0xff] }
0x1475   :  { %v1455_v27 = vpop.permute.xlu0 %1454 }
0x1476   :  { %v1457_v28 = vmul.f32 %v1455_v27, %v1450_v25 }
0x1478   :  { %1459 = vrot.lane.b32.xlu0 %v1457_v28, %s2552_s7 }
0x14e4   :  { %v1391_v30 = vpop.permute.xlu1 %1390 }
0x14e5   :  { %v1393_v31 = vadd.f32 %v1391_v30, %v1383_v29 }
0x14e7   :  { %2533 = vtanh.f32 %v1393_v31 }
0x14ea   :  { %v1460_v33 = vpop.permute.xlu0 %1459 }
0x14eb   :  { %v1462_v34 = vadd.f32 %v1460_v33, %v1452_v32 }
0x14ed   :  { %2535 = vtanh.f32 %v1462_v34  ;;  %v1867_v34 = vld [vmem:[%s3065_s2 + $0xf8] sm:$0xff] }
0x14f4   :  { %v2534_v35 = vpop.eup %2533 }
0x14f5   :  { %1396 = vrot.lane.b32.xlu1 %v2534_v35, %s2551_s6  ;;  %v1866_v35 = vld [vmem:[%s3065_s2 + $0xf0] sm:$0xff] }
0x14fa   :  { %v2536_v37 = vpop.eup %2535 }
0x14fb   :  { %1465 = vrot.lane.b32.xlu0 %v2536_v37, %s2551_s6 }
0x1567   :  { %v1397_v38 = vpop.permute.xlu1 %1396 }
0x1568   :  { %v1399_v39 = vmul.f32 %v1397_v38, %v1381_v21 }
0x156a   :  { %v1517_v40 = vpack.c.bf16 %v1399_v39, %v1399_v39 }
0x156c   :  { %1519 = vrot.lane.b32.xlu1 %v1517_v40, %s2552_s7  ;;  %v2095_v40 = vld [vmem:[%s3065_s2 + $0xe8] ss:$0 sm:$0xff] }
0x156d   :  { %v1466_v41 = vpop.permute.xlu0 %1465 }
0x156e   :  { %v1468_v42 = vmul.f32 %v1466_v41, %v1450_v25 }
0x1570   :  { %v1469_v44 = vpack.c.bf16 %v1468_v42, %v1468_v42 }
0x1572   :  { %1471 = vrot.lane.b32.xlu0 %v1469_v44, %s2552_s7 }
0x15de   :  { %v1520_v45 = vpop.permute.xlu1 %1519 }
0x15df   :  { %2398 = vmatmul.mubr.msk.bf16.vlgmr.msra.gmra.mxu0 %vm29_vm1, %v1520_v45 }
0x15e0   :  { %2409 = vmatpush3.msra.mxu0 %v1694_v13 }
0x15e1   :  { %2410 = vmatprep.subr.mxu0 %v1693_v51 }
0x15e2   :  { %2411 = vmatpush3.msra.mxu0 %v1693_v51 }
0x15e3   :  { %2412 = vmatprep.subr.mxu0 %v1692_v15 }
0x15e4   :  { %v1472_v46 = vpop.permute.xlu0 %1471  ;;  %2413 = vmatpush3.msra.mxu0 %v1692_v15 }
0x15e5   :  { %2390 = vmatmul.mubr.msk.bf16.vlgmr.msra.gmra.mxu1 %vm29_vm1, %v1472_v46 }
0x15e6   :  { %2402 = vmatpush3.msra.mxu1 %v1597_v4 }
0x15e7   :  { %2403 = vmatprep.subr.mxu1 %v1596_v5 }
0x15e8   :  { %2404 = vmatpush3.msra.mxu1 %v1596_v5 }
0x169f   :  { %v1558_v48 = vpop.f32.mrf.mxu0 }
0x16a1   :  { %v2399_v49 = vpop.f32.mrf.mxu0 }
0x16a3   :  { %v1561_v52 = vpop.f32.mrf.mxu0 }
0x16a4   :  { %v1956_v52 = vld [vmem:[%s3065_s2 + $0x108] sm:$0xf] }
0x16a5   :  { %v1510_v53 = vpop.f32.mrf.mxu1  ;;  %v2400_v54 = vpop.f32.mrf.mxu0 }
0x16a6   :  { %v1516_v57 = vadd.f32 %v2547_v56, %v1510_v53  ;;  %v2096_v53 = vld [vmem:[%s3065_s2 + $0x100] ss:$0 sm:$0xff] }
0x16a7   :  { %v2391_v58 = vpop.f32.mrf.mxu1 }
0x16a8   :  { %v1564_v59 = vadd.f32 %v1558_v48, %v1516_v57 }
0x16a9   :  { %v1513_v60 = vpop.f32.mrf.mxu1 }
0x16aa   :  { %2537 = vtanh.f32 %v1564_v59  ;;  %v1565_v8 = vmul.f32 0.5, %v1564_v59 }
0x16ab   :  { %v2392_v62 = vpop.f32.mrf.mxu1 }
0x16ac   :  { %2539 = vtanh.f32 %v1565_v8  ;;  %v2099_v62 = vld [vmem:[%s3065_s2 + $0x110] ss:$0 sm:$0xff] }
0x16b7   :  { %v2538_v1 = vpop.eup %2537 }
0x16b8   :  { %1572 = vrot.lane.b32.xlu0 %v2538_v1, %s2551_s6 }
0x16b9   :  { %v2540_v43 = vpop.eup %2539 }
0x16ba   :  { %v1567_v50 = vmul.f32 0.5, %v2540_v43 }
0x16bc   :  { %v2965_v2 = vadd.f32 0.5, %v1567_v50 }
0x172a   :  { %v1573_v3 = vpop.permute.xlu0 %1572 }
0x172b   :  { %v1575_v14 = vmul.f32 %v1573_v3, %v2965_v2 }
0x172d   :  { %1577 = vrot.lane.b32.xlu1 %v1575_v14, %s2552_s7 }
0x1731   :  { %278 = vrot.lane.b32.xlu1 %v2713_v36, %s2552_s7  ;;  %v1594_v36 = vld [vmem:[%s3067_s1] sm:$0xff] }
0x1732   :  { %2405 = vmatprep.mubr.msk.f32.mxu1 %vm1603_vm2, %v1594_v36 }
0x1735   :  { %653 = vrot.lane.b32.xlu1 %v2797_v17, %s2552_s7  ;;  %v1595_v17 = vld [vmem:[%s3067_s1 + $0x8] sm:$0xff] }
0x1736   :  { %2406 = vmatmul.mubr.msk.f32.vlgmr.msra.gmra.mxu1 %vm1603_vm2, %v1595_v17 }
0x1739   :  { %1027 = vrot.lane.b32.xlu1 %v2881_v63, %s2552_s7  ;;  %v1570_v63 = vmul.f32 %v2965_v2, %v1393_v31 }
0x173d   :  { %1401 = vrot.lane.b32.xlu1 %v1399_v39, %s2552_s7 }
0x179f   :  { %v1578_v6 = vpop.permute.xlu1 %1577 }
0x17a0   :  { %v1580_v9 = vadd.f32 %v1578_v6, %v1570_v63 }
0x17a2   :  { %2541 = vtanh.f32 %v1580_v9 }
0x17a3   :  { %v279_v47 = vpop.permute.xlu1 %278 }
0x17a4   :  { %282 = vst.msk [vmem:[#allocation3] sm:$0x3] %vm281_vm3, %v279_v47 }
0x17a7   :  { %v654_v10 = vpop.permute.xlu1 %653 }
0x17a8   :  { %656 = vst.msk [vmem:[#allocation3 + $0x4] sm:$0x3] %vm281_vm3, %v654_v10 }
0x17ab   :  { %v1028_v11 = vpop.permute.xlu1 %1027 }
0x17ac   :  { %1030 = vst.msk [vmem:[#allocation3 + $0x8] sm:$0x3] %vm281_vm3, %v1028_v11 }
0x17af   :  { %v2542_v12 = vpop.eup %2541  ;;  %v1402_v0 = vpop.permute.xlu1 %1401 }
0x17b0   :  { %1404 = vst.msk [vmem:[#allocation3 + $0xc] sm:$0x3] %vm281_vm3, %v1402_v0  ;;  %1583 = vrot.lane.b32.xlu0 %v2542_v12, %s2551_s6 }
0x17b4   :  { %466 = vrot.lane.b32.xlu0 %v2755_v26, %s2552_s7  ;;  %v2088_v26 = vld [vmem:[%s3065_s2 + $0xa0] ss:$0 sm:$0xff] }
0x17b8   :  { %840 = vrot.lane.b32.xlu0 %v2839_v7, %s2552_s7  ;;  %v1690_v7 = vld [vmem:[%s3065_s2 + $0xc0] sm:$0xff] }
0x17b9   :  { %2419 = vmatprep.subr.mxu1 %v1690_v7 }
0x17ba   :  { %2420 = vmatpush3.msra.mxu1 %v1690_v7 }
0x17bb   :  { %2421 = vmatprep.subr.mxu1 %v1689_v22 }
0x17bc   :  { %1214 = vrot.lane.b32.xlu0 %v2923_v55, %s2552_s7  ;;  %v1691_v55 = vld [vmem:[%s3065_s2 + $0xc8] sm:$0xff]  ;;  %2422 = vmatpush3.msra.mxu1 %v1689_v22 }
0x17bd   :  { %2414 = vmatprep.subr.mxu0 %v1691_v55  ;;  %2423 = vmatprep.subr.mxu1 %v1688_v23 }
0x17be   :  { %2415 = vmatpush3.msra.mxu0 %v1691_v55  ;;  %2424 = vmatpush3.msra.mxu1 %v1688_v23 }
0x17bf   :  { %2425 = vmatprep.subr.mxu1 %v1687_v24  ;;  %2430 = vmatprep.subr.mxu0 %v1867_v34 }
0x17c0   :  { %2426 = vmatpush3.msra.mxu1 %v1687_v24 }
0x17c1   :  { %2437 = vmatprep.subr.msk.mxu1 %vm1969_vm4, %v1956_v52 }
0x17f6   :  { %v2407_v16 = vpop.f32.mrf.mxu1 }
0x17f7   :  { %v1682_v20 = vadd.f32 %v2407_v16, %v2088_v26 }
0x17f8   :  { %v1676_v61 = vpop.f32.mrf.mxu1 }
0x17f9   :  { %v1677_v18 = vadd.f32 %v2088_v26, %v1676_v61  ;;  %v1686_v21 = vmax.f32 %v1682_v20, 0.0 }
0x17fb   :  { %v1685_v19 = vmax.f32 %v1677_v18, 0.0 }
0x17fd   :  { %2416 = vmatprep.mubr.msk.f32.mxu0 %vm29_vm1, %v1685_v19 }
0x17fe   :  { %2417 = vmatmul.mubr.msk.f32.vlgmr.msra.gmra.mxu0 %vm29_vm1, %v1686_v21 }
0x17ff   :  { %2431 = vmatpush3.msra.mxu0 %v1867_v34 }
0x1800   :  { %2432 = vmatprep.subr.mxu0 %v1866_v35 }
0x1801   :  { %2433 = vmatpush3.msra.mxu0 %v1866_v35 }
0x1822   :  { %v1584_v25 = vpop.permute.xlu0 %1583 }
0x1823   :  { %v1586_v27 = vmul.f32 %v1584_v25, %v2965_v2 }
0x1825   :  { %1588 = vrot.lane.b32.xlu0 %v1586_v27, %s2552_s7 }
0x1826   :  { %v467_v28 = vpop.permute.xlu0 %466 }
0x1827   :  { %469 = vst.msk [vmem:[#allocation3 + $0x2] sm:$0x3] %vm281_vm3, %v467_v28 }
0x182a   :  { %v841_v29 = vpop.permute.xlu0 %840 }
0x182b   :  { %843 = vst.msk [vmem:[#allocation3 + $0x6] sm:$0x3] %vm281_vm3, %v841_v29 }
0x182e   :  { %v1215_v30 = vpop.permute.xlu0 %1214 }
0x182f   :  { %1217 = vst.msk [vmem:[#allocation3 + $0xa] sm:$0x3] %vm281_vm3, %v1215_v30 }
0x1832   :  { %v1592_v31 = vld [vmem:[#allocation3] sm:$0xff] }
0x1833   :  { %2427 = vmatprep.mubr.msk.f32.mxu1 %vm29_vm1, %v1592_v31 }
0x1897   :  { %v1589_v32 = vpop.permute.xlu0 %1588 }
0x1898   :  { %1591 = vst.msk [vmem:[#allocation3 + $0xe] sm:$0x3] %vm281_vm3, %v1589_v32 }
0x189f   :  { %v1593_v33 = vld [vmem:[#allocation3 + $0x8] sm:$0xff] }
0x18a0   :  { %2428 = vmatmul.mubr.msk.f32.vlgmr.msra.gmra.mxu1 %vm29_vm1, %v1593_v33 }
0x18a1   :  { %2438 = vmatpush3.msk.msra.mxu1 %vm1969_vm4, %v1956_v52 }
0x18be   :  { %v2418_v37 = vpop.f32.mrf.mxu0 }
0x18c0   :  { %v1767_v41 = vpop.f32.mrf.mxu0 }
0x1960   :  { %v2429_v38 = vpop.f32.mrf.mxu1 }
0x1961   :  { %v1854_v39 = vadd.f32 %v2429_v38, %v2418_v37 }
0x1962   :  { %v1848_v42 = vpop.f32.mrf.mxu1 }
0x1963   :  { %v1849_v44 = vadd.f32 %v1848_v42, %v1767_v41  ;;  %v1863_v45 = vadd.f32 %v2095_v40, %v1854_v39 }
0x1965   :  { %v1862_v46 = vadd.f32 %v2095_v40, %v1849_v44  ;;  %v1865_v49 = vmax.f32 %v1863_v45, 0.0 }
0x1967   :  { %v1864_v48 = vmax.f32 %v1862_v46, 0.0 }
0x1969   :  { %2434 = vmatprep.mubr.msk.f32.mxu0 %vm1603_vm2, %v1864_v48 }
0x196a   :  { %2435 = vmatmul.mubr.msk.f32.vlgmr.msra.gmra.mxu0 %vm1603_vm2, %v1865_v49 }
0x1a2a   :  { %v2436_v54 = vpop.f32.mrf.mxu0 }
0x1a2b   :  { %v1951_v56 = vadd.f32 %v2436_v54, %v2096_v53 }
0x1a2c   :  { %v1945_v57 = vpop.f32.mrf.mxu0 }
0x1a2d   :  { %v1946_v58 = vadd.f32 %v2096_v53, %v1945_v57  ;;  %v1955_v60 = vmax.f32 %v1951_v56, 0.0 }
0x1a2f   :  { %v1954_v59 = vmax.f32 %v1946_v58, 0.0 }
0x1a31   :  { %2439 = vmatprep.mubr.msk.f32.mxu1 %vm1962_vm5, %v1954_v59 }
0x1a32   :  { %2440 = vmatmul.mubr.msk.f32.vlgmr.msra.gmra.mxu1 %vm1962_vm5, %v1955_v60 }
0x1af2   :  { %v2441_v1 = vpop.f32.mrf.mxu1 }
0x1af3   :  { %v2045_v8 = vadd.f32 %v2441_v1, %v2099_v62 }
0x1af4   :  { %v2039_v43 = vpop.f32.mrf.mxu1 }
0x1af5   :  { %v2049_v50 = vmul.f32 0.5, %v2045_v8  ;;  %v2040_v2 = vadd.f32 %v2099_v62, %v2039_v43 }
0x1af7   :  { %2543 = vtanh.f32 %v2049_v50  ;;  %v2048_v3 = vmul.f32 0.5, %v2040_v2 }
0x1af9   :  { %2545 = vtanh.f32 %v2048_v3 }
0x1b04   :  { %v2544_v14 = vpop.eup %2543 }
0x1b05   :  { %v2053_v4 = vmul.f32 0.5, %v2544_v14 }
0x1b06   :  { %v2546_v5 = vpop.eup %2545 }
0x1b07   :  { %v2055_v36 = vadd.f32 0.5, %v2053_v4  ;;  %v2052_v17 = vmul.f32 0.5, %v2546_v5 }
0x1b09   :  { %2058 = vst.msk [vmem:[%s3068_s3 + $0x8] sm:$0xff] %vm2056_vm6, %v2055_v36  ;;  %v2054_v63 = vadd.f32 0.5, %v2052_v17 }
0x1b0b   :  { %2057 = vst.msk [vmem:[%s3068_s3] sm:$0xff] %vm2056_vm6, %v2054_v63 }

</bundles_post_ra>
